<compile_context>
chip_gen: v7x
topology: tpu7x:2x2x1
jax: 0.10.0
libtpu: 0.0.40
codegen_flags: <defaults>
</compile_context>

<pallas_src>
import functools

import jax
import jax.numpy as jnp
from jax.experimental import pallas as pl
from jax.experimental.pallas import tpu as pltpu


# ----------------------------- configuration -------------------------------
B = 2            # batch
C_IN = 4         # in_channels
C_HID = 32       # out_channels (hidden)
H = W = 16       # frame_size
KH = KW = 3      # kernel_size
PAD = 1          # padding ("same")
DT = 0.1
ALPHA = 1.0
BETA = 1.0
ACTIVATION = "tanh"   # 'tanh' or 'relu'

HW = H * W
K_X = KH * KW * C_IN          # im2col width for x          (36)
K_H = KH * KW * C_HID         # im2col width for h/h_delay  (288)
N_COLS = B * HW               # lanes: batch folded into spatial (512)

N_BLOCKS = 4                  # lane-block grid (128-lane blocks)
N_LANES = N_COLS // N_BLOCKS  # 128


# ------------------------------- Pallas kernel ------------------------------
def _taugru_kernel(colx_ref, colh_ref, colhd_ref,
                   wx_ref, wh_ref, whd_ref,
                   bx_ref, bh_ref, bhd_ref,
                   h_ref, hd_ref, wd1_ref, wd2_ref,
                   o_ref, *, nhid, dt, alpha, beta, activation):
    act = jnp.tanh if activation == "tanh" else jax.nn.relu

    # Three dense conv-as-matmuls on the MXU (bf16 operands, f32 accumulation),
    # each followed by a small per-block bias add.
    convx = jnp.dot(wx_ref[...], colx_ref[...],
                    preferred_element_type=jnp.float32) + bx_ref[...]   # (4C, n)
    convh = jnp.dot(wh_ref[...], colh_ref[...],
                    preferred_element_type=jnp.float32) + bh_ref[...]   # (3C, n)
    convhd = jnp.dot(whd_ref[...], colhd_ref[...],
                     preferred_element_type=jnp.float32) + bhd_ref[...]  # (C, n)

    c = nhid
    in_ux = convx[0 * c:1 * c]
    in_zx = convx[1 * c:2 * c]
    in_gx = convx[2 * c:3 * c]
    in_ax = convx[3 * c:4 * c]
    in_uh = convh[0 * c:1 * c]
    in_gh = convh[1 * c:2 * c]
    in_ah = convh[2 * c:3 * c]
    in_zhd = convhd

    h = h_ref[...]            # (C, n)  lane-dense
    hd = hd_ref[...]          # (C, n)

    # gating (VPU / EUP)
    G = dt * jax.nn.sigmoid(in_gx + in_gh + wd1_ref[...] * hd)
    A = jax.nn.sigmoid(in_ax + in_ah + wd2_ref[...] * hd)
    U = act(in_ux + in_uh)
    Z = act(in_zx + in_zhd)

    # (1 - G) * h + G * expr  ==  h + G * (expr - h)
    o_ref[...] = h + G * (beta * U + alpha * A * Z - h)


# ------------------------------ wrapper glue --------------------------------
def _im2col_T(x, kh, kw, pad):
    """x: (B, H, W, C) -> (kh*kw*C, B*H*W) zero-padded 'same' patches (transposed)."""
    b, h, w, c = x.shape
    xp = jnp.pad(x, ((0, 0), (pad, pad), (pad, pad), (0, 0)))
    cols = []
    for dy in range(kh):
        for dx in range(kw):
            cols.append(xp[:, dy:dy + h, dx:dx + w, :])
    col = jnp.concatenate(cols, axis=-1).reshape(b, h * w, kh * kw * c)
    return col.transpose(2, 0, 1).reshape(kh * kw * c, b * h * w)


def prepare_taugru_params(params):
    """Loop-invariant parameter prep (run ONCE per model, not per time step):
    weight transposes + bf16 cast, bias reshape to (nC,1), W_decay tiling to (C,N)."""
    wx, bx, wh, bh, whd, bhd, wd1, wd2 = params
    wxT = jnp.asarray(wx.T, jnp.bfloat16)                    # (4C, K_X)
    whT = jnp.asarray(wh.T, jnp.bfloat16)                    # (3C, K_H)
    whdT = jnp.asarray(whd.T, jnp.bfloat16)                  # (C,  K_H)
    bx2 = jnp.asarray(bx.reshape(-1, 1), jnp.float32)        # (4C, 1)
    bh2 = jnp.asarray(bh.reshape(-1, 1), jnp.float32)        # (3C, 1)
    bhd2 = jnp.asarray(bhd.reshape(-1, 1), jnp.float32)      # (C, 1)
    wd_cn = lambda wd: jnp.tile(wd.reshape(HW, C_HID).T, (1, B))  # (C, N)
    return (wxT, whT, whdT, bx2, bh2, bhd2, wd_cn(wd1), wd_cn(wd2))


@jax.jit
def taugru_cell_forward(x, h, h_delay, prepared):
    """x: (B, H, W, C_IN); h, h_delay: (B, H, W, C_HID) -> new h (B, H, W, C_HID)."""
    wxT, whT, whdT, bx2, bh2, bhd2, wd1T, wd2T = prepared

    # im2col patches in transposed, batch-folded layout; bf16 MXU operands.
    colxT = _im2col_T(x, KH, KW, PAD).astype(jnp.bfloat16)        # (K_X, N)
    colhT = _im2col_T(h, KH, KW, PAD).astype(jnp.bfloat16)        # (K_H, N)
    colhdT = _im2col_T(h_delay, KH, KW, PAD).astype(jnp.bfloat16)  # (K_H, N)

    to_cn = lambda a: a.reshape(B, HW, C_HID).transpose(2, 0, 1).reshape(C_HID, N_COLS)
    hT = to_cn(h)
    hdT = to_cn(h_delay)

    lane_spec = lambda rows: pl.BlockSpec((rows, N_LANES), lambda i: (0, i))
    fixed = lambda shp: pl.BlockSpec(shp, lambda i: (0, 0))
    chan_spec = lane_spec(C_HID)

    kernel = functools.partial(
        _taugru_kernel, nhid=C_HID, dt=DT, alpha=ALPHA, beta=BETA,
        activation=ACTIVATION)

    out = pl.pallas_call(
        kernel,
        out_shape=jax.ShapeDtypeStruct((C_HID, N_COLS), jnp.float32),
        grid_spec=pltpu.PrefetchScalarGridSpec(
            num_scalar_prefetch=0,
            grid=(N_BLOCKS,),
            in_specs=[
                lane_spec(K_X),                    # colx   (K_X, n) bf16
                lane_spec(K_H),                    # colh   (K_H, n) bf16
                lane_spec(K_H),                    # colhd  (K_H, n) bf16
                fixed((4 * C_HID, K_X)),           # wx     (4C, K_X) bf16  (resident)
                fixed((3 * C_HID, K_H)),           # wh     (3C, K_H) bf16  (resident)
                fixed((C_HID, K_H)),               # whd    (C,  K_H) bf16  (resident)
                fixed((4 * C_HID, 1)),             # bx     (4C, 1) f32
                fixed((3 * C_HID, 1)),             # bh     (3C, 1) f32
                fixed((C_HID, 1)),                 # bhd    (C, 1)  f32
                chan_spec,                         # h        (C, n)
                chan_spec,                         # h_delay  (C, n)
                chan_spec,                         # W_decay1 (C, n)
                chan_spec,                         # W_decay2 (C, n)
            ],
            out_specs=chan_spec,                   # lane-dense output (C, n)
        ),
        compiler_params=pltpu.CompilerParams(
            dimension_semantics=("parallel",)),
    )(colxT, colhT, colhdT, wxT, whT, whdT, bx2, bh2, bhd2, hT, hdT, wd1T, wd2T)

    # (C, B*HW) -> (B, H, W, C)
    return out.reshape(C_HID, B, HW).transpose(1, 2, 0).reshape(B, H, W, C_HID)


# ----------------------------- pure-JAX reference ---------------------------
@jax.jit
def taugru_cell_reference(x, h, h_delay, params):
    wx, bx, wh, bh, whd, bhd, wd1, wd2 = params
    act = jnp.tanh if ACTIVATION == "tanh" else jax.nn.relu

    def conv(inp, w_mat, b_vec, cin):
        w_hwio = w_mat.reshape(KH, KW, cin, -1)
        y = jax.lax.conv_general_dilated(
            inp, w_hwio, window_strides=(1, 1), padding="SAME",
            dimension_numbers=("NHWC", "HWIO", "NHWC"))
        return y + b_vec.reshape(1, 1, 1, -1)

    convx = conv(x, wx, bx, C_IN)
    convh = conv(h, wh, bh, C_HID)
    convhd = conv(h_delay, whd, bhd, C_HID)

    in_ux, in_zx, in_gx, in_ax = jnp.split(convx, 4, axis=-1)
    in_uh, in_gh, in_ah = jnp.split(convh, 3, axis=-1)

    G = DT * jax.nn.sigmoid(in_gx + in_gh + wd1[None] * h_delay)
    A = jax.nn.sigmoid(in_ax + in_ah + wd2[None] * h_delay)
    U = act(in_ux + in_uh)
    Z = act(in_zx + convhd)
    return (1.0 - G) * h + G * (BETA * U + ALPHA * A * Z)


# ---------------------------------- main -------------------------------------
if __name__ == "__main__":
    key = jax.random.PRNGKey(0)
    ks = jax.random.split(key, 16)

    # deterministic synthetic parameters (matmul layout = flattened HWIO)
    scale = 0.1
    wx = scale * jax.random.normal(ks[0], (K_X, 4 * C_HID), jnp.float32)
    bx = scale * jax.random.normal(ks[1], (1, 4 * C_HID), jnp.float32)
    wh = scale * jax.random.normal(ks[2], (K_H, 3 * C_HID), jnp.float32)
    bh = scale * jax.random.normal(ks[3], (1, 3 * C_HID), jnp.float32)
    whd = scale * jax.random.normal(ks[4], (K_H, C_HID), jnp.float32)
    bhd = scale * jax.random.normal(ks[5], (1, C_HID), jnp.float32)
    wd1 = scale * jax.random.normal(ks[6], (H, W, C_HID), jnp.float32)
    wd2 = scale * jax.random.normal(ks[7], (H, W, C_HID), jnp.float32)
    params = (wx, bx, wh, bh, whd, bhd, wd1, wd2)

    # one-time parameter packing (hoisted out of the per-step forward)
    prepared = jax.tree_util.tree_map(jax.block_until_ready,
                                      prepare_taugru_params(params))

    # inputs (NHWC)
    x = jax.random.normal(ks[8], (B, H, W, C_IN), jnp.float32)
    h = jax.random.normal(ks[9], (B, H, W, C_HID), jnp.float32)
    h_delay = jax.random.normal(ks[10], (B, H, W, C_HID), jnp.float32)

    h_new = jax.block_until_ready(taugru_cell_forward(x, h, h_delay, prepared))
    h_ref = jax.block_until_ready(taugru_cell_reference(x, h, h_delay, params))

    assert h_new.shape == (B, H, W, C_HID)
    max_err = float(jnp.max(jnp.abs(h_new - h_ref)))
    assert jnp.allclose(h_new, h_ref, atol=2e-3, rtol=2e-3), max_err

    print("KERNEL_OK")
</pallas_src>

<mosaic_0001>
module attributes {stable_mosaic.version = 11 : i64} {
  func.func @_taugru_kernel(%arg0: i32, %arg1: memref<36x128xbf16, #tpu.memory_space<vmem>>, %arg2: memref<288x128xbf16, #tpu.memory_space<vmem>>, %arg3: memref<288x128xbf16, #tpu.memory_space<vmem>>, %arg4: memref<128x36xbf16, #tpu.memory_space<vmem>>, %arg5: memref<96x288xbf16, #tpu.memory_space<vmem>>, %arg6: memref<32x288xbf16, #tpu.memory_space<vmem>>, %arg7: memref<128x1xf32, #tpu.memory_space<vmem>>, %arg8: memref<96x1xf32, #tpu.memory_space<vmem>>, %arg9: memref<32x1xf32, #tpu.memory_space<vmem>>, %arg10: memref<32x128xf32, #tpu.memory_space<vmem>>, %arg11: memref<32x128xf32, #tpu.memory_space<vmem>>, %arg12: memref<32x128xf32, #tpu.memory_space<vmem>>, %arg13: memref<32x128xf32, #tpu.memory_space<vmem>>, %arg14: memref<32x128xf32, #tpu.memory_space<vmem>>) attributes {dimension_semantics = [#tpu.dimension_semantics<parallel>], iteration_bounds = array<i64: 4>, scalar_prefetch = 0 : i64, scratch_operands = 0 : i64, tpu.core_type = #tpu.core_type<tc>, window_params = [{transform_indices = @transform_0, window_bounds = array<i64: 36, 128>}, {transform_indices = @transform_1, window_bounds = array<i64: 288, 128>}, {transform_indices = @transform_2, window_bounds = array<i64: 288, 128>}, {pipeline_mode = #tpu.pipeline_mode<synchronous>, transform_indices = @transform_3, window_bounds = array<i64: 128, 36>}, {pipeline_mode = #tpu.pipeline_mode<synchronous>, transform_indices = @transform_4, window_bounds = array<i64: 96, 288>}, {pipeline_mode = #tpu.pipeline_mode<synchronous>, transform_indices = @transform_5, window_bounds = array<i64: 32, 288>}, {pipeline_mode = #tpu.pipeline_mode<synchronous>, transform_indices = @transform_6, window_bounds = array<i64: 128, 1>}, {pipeline_mode = #tpu.pipeline_mode<synchronous>, transform_indices = @transform_7, window_bounds = array<i64: 96, 1>}, {pipeline_mode = #tpu.pipeline_mode<synchronous>, transform_indices = @transform_8, window_bounds = array<i64: 32, 1>}, {transform_indices = @transform_9, window_bounds = array<i64: 32, 128>}, {transform_indices = @transform_10, window_bounds = array<i64: 32, 128>}, {transform_indices = @transform_11, window_bounds = array<i64: 32, 128>}, {transform_indices = @transform_12, window_bounds = array<i64: 32, 128>}, {transform_indices = @transform_13, window_bounds = array<i64: 32, 128>}]} {
    %c0 = arith.constant 0 : index
    %c0_0 = arith.constant 0 : index
    %0 = vector.load %arg4[%c0, %c0_0] : memref<128x36xbf16, #tpu.memory_space<vmem>>, vector<128x36xbf16>
    %c0_1 = arith.constant 0 : index
    %c0_2 = arith.constant 0 : index
    %1 = vector.load %arg1[%c0_1, %c0_2] : memref<36x128xbf16, #tpu.memory_space<vmem>>, vector<36x128xbf16>
    %cst = arith.constant dense<0.000000e+00> : vector<128x128xf32>
    %2 = tpu.matmul %0, %1, %cst {dimension_numbers = #tpu.dot_dimension_numbers<[1], [0], [0], [1], [0, 0, 1, 1], [], []>} : vector<128x36xbf16>, vector<36x128xbf16>, vector<128x128xf32> -> vector<128x128xf32>
    %c0_3 = arith.constant 0 : index
    %c0_4 = arith.constant 0 : index
    %3 = vector.load %arg7[%c0_3, %c0_4] : memref<128x1xf32, #tpu.memory_space<vmem>>, vector<128x1xf32>
    %4 = vector.broadcast %3 : vector<128x1xf32> to vector<128x128xf32>
    %5 = arith.addf %2, %4 : vector<128x128xf32>
    %c0_5 = arith.constant 0 : index
    %c0_6 = arith.constant 0 : index
    %6 = vector.load %arg5[%c0_5, %c0_6] : memref<96x288xbf16, #tpu.memory_space<vmem>>, vector<96x288xbf16>
    %c0_7 = arith.constant 0 : index
    %c0_8 = arith.constant 0 : index
    %7 = vector.load %arg2[%c0_7, %c0_8] : memref<288x128xbf16, #tpu.memory_space<vmem>>, vector<288x128xbf16>
    %cst_9 = arith.constant dense<0.000000e+00> : vector<96x128xf32>
    %8 = tpu.matmul %6, %7, %cst_9 {dimension_numbers = #tpu.dot_dimension_numbers<[1], [0], [0], [1], [0, 0, 1, 1], [], []>} : vector<96x288xbf16>, vector<288x128xbf16>, vector<96x128xf32> -> vector<96x128xf32>
    %c0_10 = arith.constant 0 : index
    %c0_11 = arith.constant 0 : index
    %9 = vector.load %arg8[%c0_10, %c0_11] : memref<96x1xf32, #tpu.memory_space<vmem>>, vector<96x1xf32>
    %10 = vector.broadcast %9 : vector<96x1xf32> to vector<96x128xf32>
    %11 = arith.addf %8, %10 : vector<96x128xf32>
    %c0_12 = arith.constant 0 : index
    %c0_13 = arith.constant 0 : index
    %12 = vector.load %arg6[%c0_12, %c0_13] : memref<32x288xbf16, #tpu.memory_space<vmem>>, vector<32x288xbf16>
    %c0_14 = arith.constant 0 : index
    %c0_15 = arith.constant 0 : index
    %13 = vector.load %arg3[%c0_14, %c0_15] : memref<288x128xbf16, #tpu.memory_space<vmem>>, vector<288x128xbf16>
    %cst_16 = arith.constant dense<0.000000e+00> : vector<32x128xf32>
    %14 = tpu.matmul %12, %13, %cst_16 {dimension_numbers = #tpu.dot_dimension_numbers<[1], [0], [0], [1], [0, 0, 1, 1], [], []>} : vector<32x288xbf16>, vector<288x128xbf16>, vector<32x128xf32> -> vector<32x128xf32>
    %c0_17 = arith.constant 0 : index
    %c0_18 = arith.constant 0 : index
    %15 = vector.load %arg9[%c0_17, %c0_18] : memref<32x1xf32, #tpu.memory_space<vmem>>, vector<32x1xf32>
    %16 = vector.broadcast %15 : vector<32x1xf32> to vector<32x128xf32>
    %17 = arith.addf %14, %16 : vector<32x128xf32>
    %18 = vector.extract_strided_slice %5 {offsets = [0, 0], sizes = [32, 128], strides = [1, 1]} : vector<128x128xf32> to vector<32x128xf32>
    %19 = vector.extract_strided_slice %5 {offsets = [32, 0], sizes = [32, 128], strides = [1, 1]} : vector<128x128xf32> to vector<32x128xf32>
    %20 = vector.extract_strided_slice %5 {offsets = [64, 0], sizes = [32, 128], strides = [1, 1]} : vector<128x128xf32> to vector<32x128xf32>
    %21 = vector.extract_strided_slice %5 {offsets = [96, 0], sizes = [32, 128], strides = [1, 1]} : vector<128x128xf32> to vector<32x128xf32>
    %22 = vector.extract_strided_slice %11 {offsets = [0, 0], sizes = [32, 128], strides = [1, 1]} : vector<96x128xf32> to vector<32x128xf32>
    %23 = vector.extract_strided_slice %11 {offsets = [32, 0], sizes = [32, 128], strides = [1, 1]} : vector<96x128xf32> to vector<32x128xf32>
    %24 = vector.extract_strided_slice %11 {offsets = [64, 0], sizes = [32, 128], strides = [1, 1]} : vector<96x128xf32> to vector<32x128xf32>
    %c0_19 = arith.constant 0 : index
    %c0_20 = arith.constant 0 : index
    %25 = vector.load %arg10[%c0_19, %c0_20] : memref<32x128xf32, #tpu.memory_space<vmem>>, vector<32x128xf32>
    %c0_21 = arith.constant 0 : index
    %c0_22 = arith.constant 0 : index
    %26 = vector.load %arg11[%c0_21, %c0_22] : memref<32x128xf32, #tpu.memory_space<vmem>>, vector<32x128xf32>
    %27 = arith.addf %20, %23 : vector<32x128xf32>
    %c0_23 = arith.constant 0 : index
    %c0_24 = arith.constant 0 : index
    %28 = vector.load %arg12[%c0_23, %c0_24] : memref<32x128xf32, #tpu.memory_space<vmem>>, vector<32x128xf32>
    %29 = arith.mulf %28, %26 : vector<32x128xf32>
    %30 = arith.addf %27, %29 : vector<32x128xf32>
    %31 = arith.negf %30 : vector<32x128xf32>
    %32 = math.exp %31 : vector<32x128xf32>
    %cst_25 = arith.constant 1.000000e+00 : f32
    %33 = vector.broadcast %cst_25 : f32 to vector<32x128xf32>
    %34 = arith.addf %33, %32 : vector<32x128xf32>
    %35 = arith.divf %33, %34 : vector<32x128xf32>
    %cst_26 = arith.constant 1.000000e-01 : f32
    %36 = vector.broadcast %cst_26 : f32 to vector<32x128xf32>
    %37 = arith.mulf %36, %35 : vector<32x128xf32>
    %38 = arith.addf %21, %24 : vector<32x128xf32>
    %c0_27 = arith.constant 0 : index
    %c0_28 = arith.constant 0 : index
    %39 = vector.load %arg13[%c0_27, %c0_28] : memref<32x128xf32, #tpu.memory_space<vmem>>, vector<32x128xf32>
    %40 = arith.mulf %39, %26 : vector<32x128xf32>
    %41 = arith.addf %38, %40 : vector<32x128xf32>
    %42 = arith.negf %41 : vector<32x128xf32>
    %43 = math.exp %42 : vector<32x128xf32>
    %cst_29 = arith.constant 1.000000e+00 : f32
    %44 = vector.broadcast %cst_29 : f32 to vector<32x128xf32>
    %45 = arith.addf %44, %43 : vector<32x128xf32>
    %46 = arith.divf %44, %45 : vector<32x128xf32>
    %47 = arith.addf %18, %22 : vector<32x128xf32>
    %48 = math.tanh %47 : vector<32x128xf32>
    %49 = arith.addf %19, %17 : vector<32x128xf32>
    %50 = math.tanh %49 : vector<32x128xf32>
    %cst_30 = arith.constant 1.000000e+00 : f32
    %51 = vector.broadcast %cst_30 : f32 to vector<32x128xf32>
    %52 = arith.mulf %51, %48 : vector<32x128xf32>
    %cst_31 = arith.constant 1.000000e+00 : f32
    %53 = vector.broadcast %cst_31 : f32 to vector<32x128xf32>
    %54 = arith.mulf %53, %46 : vector<32x128xf32>
    %55 = arith.mulf %54, %50 : vector<32x128xf32>
    %56 = arith.addf %52, %55 : vector<32x128xf32>
    %57 = arith.subf %56, %25 : vector<32x128xf32>
    %58 = arith.mulf %37, %57 : vector<32x128xf32>
    %59 = arith.addf %25, %58 : vector<32x128xf32>
    %c0_32 = arith.constant 0 : index
    %c0_33 = arith.constant 0 : index
    %60 = vector.load %arg14[%c0_32, %c0_33] : memref<32x128xf32, #tpu.memory_space<vmem>>, vector<32x128xf32>
    tpu.vector_store %arg14[%c0_32, %c0_33], %59 {strides = array<i32>} : memref<32x128xf32, #tpu.memory_space<vmem>>, vector<32x128xf32>,
    return
  }
  func.func @transform_0(%arg0: i32) -> (i32, i32) {
    %c0_i32 = arith.constant 0 : i32
    %c0_i32_0 = arith.constant 0 : i32
    return %c0_i32, %arg0 : i32, i32
  }
  func.func @transform_1(%arg0: i32) -> (i32, i32) {
    %c0_i32 = arith.constant 0 : i32
    %c0_i32_0 = arith.constant 0 : i32
    return %c0_i32, %arg0 : i32, i32
  }
  func.func @transform_2(%arg0: i32) -> (i32, i32) {
    %c0_i32 = arith.constant 0 : i32
    %c0_i32_0 = arith.constant 0 : i32
    return %c0_i32, %arg0 : i32, i32
  }
  func.func @transform_3(%arg0: i32) -> (i32, i32) {
    %c0_i32 = arith.constant 0 : i32
    %c0_i32_0 = arith.constant 0 : i32
    %c0_i32_1 = arith.constant 0 : i32
    return %c0_i32, %c0_i32_0 : i32, i32
  }
  func.func @transform_4(%arg0: i32) -> (i32, i32) {
    %c0_i32 = arith.constant 0 : i32
    %c0_i32_0 = arith.constant 0 : i32
    %c0_i32_1 = arith.constant 0 : i32
    return %c0_i32, %c0_i32_0 : i32, i32
  }
  func.func @transform_5(%arg0: i32) -> (i32, i32) {
    %c0_i32 = arith.constant 0 : i32
    %c0_i32_0 = arith.constant 0 : i32
    %c0_i32_1 = arith.constant 0 : i32
    return %c0_i32, %c0_i32_0 : i32, i32
  }
  func.func @transform_6(%arg0: i32) -> (i32, i32) {
    %c0_i32 = arith.constant 0 : i32
    %c0_i32_0 = arith.constant 0 : i32
    %c0_i32_1 = arith.constant 0 : i32
    return %c0_i32, %c0_i32_0 : i32, i32
  }
  func.func @transform_7(%arg0: i32) -> (i32, i32) {
    %c0_i32 = arith.constant 0 : i32
    %c0_i32_0 = arith.constant 0 : i32
    %c0_i32_1 = arith.constant 0 : i32
    return %c0_i32, %c0_i32_0 : i32, i32
  }
  func.func @transform_8(%arg0: i32) -> (i32, i32) {
    %c0_i32 = arith.constant 0 : i32
    %c0_i32_0 = arith.constant 0 : i32
    %c0_i32_1 = arith.constant 0 : i32
    return %c0_i32, %c0_i32_0 : i32, i32
  }
  func.func @transform_9(%arg0: i32) -> (i32, i32) {
    %c0_i32 = arith.constant 0 : i32
    %c0_i32_0 = arith.constant 0 : i32
    return %c0_i32, %arg0 : i32, i32
  }
  func.func @transform_10(%arg0: i32) -> (i32, i32) {
    %c0_i32 = arith.constant 0 : i32
    %c0_i32_0 = arith.constant 0 : i32
    return %c0_i32, %arg0 : i32, i32
  }
  func.func @transform_11(%arg0: i32) -> (i32, i32) {
    %c0_i32 = arith.constant 0 : i32
    %c0_i32_0 = arith.constant 0 : i32
    return %c0_i32, %arg0 : i32, i32
  }
  func.func @transform_12(%arg0: i32) -> (i32, i32) {
    %c0_i32 = arith.constant 0 : i32
    %c0_i32_0 = arith.constant 0 : i32
    return %c0_i32, %arg0 : i32, i32
  }
  func.func @transform_13(%arg0: i32) -> (i32, i32) {
    %c0_i32 = arith.constant 0 : i32
    %c0_i32_0 = arith.constant 0 : i32
    return %c0_i32, %arg0 : i32, i32
  }
}

</mosaic_0001>

<bundles_post_ra>
// kernel: taugru_cell_forward.1
= control target key start
LH: loop header
LB: loop body
LE: loop exit
PB: predicated region body
PF: predicated region fallthrough
CT: control target
= control target key end

     0   :  { %s3199_s25 = smov 0   ;;  %s3201_s26 = smov 0   ;;  %s3887_s0 = inlined_call_operand.vmem [shape: bf16[36,512], index: 0, kind: input, shape index: {}]   ;;  %s3888_s1 = inlined_call_operand.vmem [shape: bf16[288,512], index: 1, kind: input, shape index: {}]   ;;  %s3889_s2 = inlined_call_operand.vmem [shape: bf16[288,512], index: 2, kind: input, shape index: {}]   ;;  %s3890_s3 = inlined_call_operand.vmem [shape: bf16[128,36], index: 3, kind: input, shape index: {}]   ;;  %s3891_s4 = inlined_call_operand.vmem [shape: bf16[96,288], index: 4, kind: input, shape index: {}]   ;;  %s3892_s5 = inlined_call_operand.vmem [shape: bf16[32,288], index: 5, kind: input, shape index: {}]   ;;  %s3893_s6 = inlined_call_operand.vmem [shape: f32[128,1], index: 6, kind: input, shape index: {}]   ;;  %s3894_s7 = inlined_call_operand.vmem [shape: f32[96,1], index: 7, kind: input, shape index: {}]   ;;  %s3895_s8 = inlined_call_operand.vmem [shape: f32[32,1], index: 8, kind: input, shape index: {}]   ;;  %s3896_s9 = inlined_call_operand.vmem [shape: f32[32,512], index: 9, kind: input, shape index: {}]   ;;  %s3897_s10 = inlined_call_operand.vmem [shape: f32[32,512], index: 10, kind: input, shape index: {}]   ;;  %s3898_s11 = inlined_call_operand.vmem [shape: f32[32,512], index: 11, kind: input, shape index: {}]   ;;  %s3899_s12 = inlined_call_operand.vmem [shape: f32[32,512], index: 12, kind: input, shape index: {}]   ;;  %s3900_s13 = inlined_call_operand.vmem [shape: f32[32,512], index: 13, kind: output, shape index: {}]  }
   0x1   :  { %s3203_s27 = smov 0  }
   0x2 LB: > { %s2627_s28 = sadd.s32 4294967295, %s3126_s27   ;;  %s3216_s29 = sadd.s32 1, %s3126_s27   ;;  %s3126_s27 = sphi %s3203_s27, %s3933_s27   ;;  %s3122_s26 = sphi %s3201_s26, %s3932_s26   ;;  %s3118_s25 = sphi %s3199_s25, %s3931_s25  }
   0x3   : > { %s27_s30 = ssub.s32 %s3126_s27, %s3216_s29  ;;  %s30_s14 = sadd.s32 1, %s3122_s26 }
   0x4   : > { %p28_p0 = scmp.eq.s32.totalorder %s27_s30, 0  ;;  %p37_p1 = scmp.ne.s32.totalorder %s3122_s26, %s3118_s25 }
   0x5   : > { %p38_p2 = scmp.eq.s32.totalorder %s3126_s27, 0  ;;  %p349_p3 = scmp.eq.s32.totalorder %s2627_s28, 3 }
   0x6   : > { %s3227_s15 = scalar_select %p28_p0, %s3122_s26, %s30_s14  }
   0x7   : > { %p3229_p4 = por %p38_p2, %p37_p1  ;;  %p3233_p5 = por %p349_p3, %p37_p1 }
   0x8   : > { %p2630_p6 = scmp.ge.s32.totalorder %s3126_s27, 4 }
   0xa   : > { %389 = sbr.rel (%p2630_p6) target bundleno = 112 (0x70), region = 40 }
  0x11   : > { %392 = sbr.rel (!%p3229_p4) target bundleno = 24 (0x18), region = 44  ;;  %s394_s18 = sand.u32 (%p3229_p4), 1, %s3122_s26  }
  0x12   : > { %s2631_s19 = sshll.u32 (%p3229_p4), %s3126_s27, 2  ;;  %s2945_s20 = smul.u32 (%p3229_p4), 20, %s394_s18 }
  0x13   : > { %s398_s23 = scalar_lea.vmem (%p3229_p4), %s3887_s0, %s2631_s19 }
  0x14   : > { %v414_v0 = vld [vmem:[%s398_s23] sm:$0xf] (%p3229_p4)  ;;  %v416_v1 = vld [vmem:[%s398_s23 + $0x10] sm:$0xf] (%p3229_p4)  ;;  %s396_s24 = scalar_lea.vmem (%p3229_p4), [#allocation2], %s2945_s20 }
  0x15   : > { %v418_v2 = vld [vmem:[%s398_s23 + $0x20] sm:$0xf] (%p3229_p4)  ;;  %v420_v3 = vld [vmem:[%s398_s23 + $0x30] sm:$0xf] (%p3229_p4)  ;;  %415 = vst [vmem:[%s396_s24] sm:$0xf] (%p3229_p4), %v414_v0 }
  0x16   : > { %v422_v4 = vld [vmem:[%s398_s23 + $0x40] sm:$0xf] (%p3229_p4)  ;;  %417 = vst [vmem:[%s396_s24 + $0x4] sm:$0xf] (%p3229_p4), %v416_v1  ;;  %419 = vst [vmem:[%s396_s24 + $0x8] sm:$0xf] (%p3229_p4), %v418_v2 }
  0x17   : > { %421 = vst [vmem:[%s396_s24 + $0xc] sm:$0xf] (%p3229_p4), %v420_v3  ;;  %423 = vst [vmem:[%s396_s24 + $0x10] sm:$0xf] (%p3229_p4), %v422_v4 }
  0x18 PF: > { %456 = sbr.rel (!%p3229_p4) target bundleno = 52 (0x34), region = 85  ;;  %s458_s30 = sand.u32 (%p3229_p4), 1, %s3122_s26  }
  0x19   : > { %s2632_s14 = sshll.u32 (%p3229_p4), %s3126_s27, 2  ;;  %s2946_s18 = smul.u32 (%p3229_p4), 144, %s458_s30 }
  0x1a   : > { %s3252_s22 = scalar_lea.vmem (%p3229_p4), %s3888_s1, %s2632_s14 }
  0x1b   : > { %v478_v5 = vld [vmem:[%s3252_s22] sm:$0xf] (%p3229_p4)  ;;  %v480_v6 = vld [vmem:[%s3252_s22 + $0x10] sm:$0xf] (%p3229_p4)  ;;  %s3259_s20 = scalar_lea.vmem (%p3229_p4), [#allocation3], %s2946_s18 }
  0x1c   : > { %v482_v7 = vld [vmem:[%s3252_s22 + $0x20] sm:$0xf] (%p3229_p4)  ;;  %v484_v8 = vld [vmem:[%s3252_s22 + $0x30] sm:$0xf] (%p3229_p4)  ;;  %479 = vst [vmem:[%s3259_s20] sm:$0xf] (%p3229_p4), %v478_v5 }
  0x1d   : > { %v486_v9 = vld [vmem:[%s3252_s22 + $0x40] sm:$0xf] (%p3229_p4)  ;;  %481 = vst [vmem:[%s3259_s20 + $0x4] sm:$0xf] (%p3229_p4), %v480_v6  ;;  %483 = vst [vmem:[%s3259_s20 + $0x8] sm:$0xf] (%p3229_p4), %v482_v7 }
  0x1e   : > { %485 = vst [vmem:[%s3259_s20 + $0xc] sm:$0xf] (%p3229_p4), %v484_v8  ;;  %487 = vst [vmem:[%s3259_s20 + $0x10] sm:$0xf] (%p3229_p4), %v486_v9  ;;  %v488_v10 = vld [vmem:[%s3252_s22 + $0x50] sm:$0xf] (%p3229_p4) }
  0x1f   : > { %v490_v11 = vld [vmem:[%s3252_s22 + $0x60] sm:$0xf]  ;;  %v492_v12 = vld [vmem:[%s3252_s22 + $0x70] sm:$0xf]  ;;  %489 = vst [vmem:[%s3259_s20 + $0x14] sm:$0xf] %v488_v10 }
  0x20   : > { %491 = vst [vmem:[%s3259_s20 + $0x18] sm:$0xf] %v490_v11  ;;  %493 = vst [vmem:[%s3259_s20 + $0x1c] sm:$0xf] %v492_v12  ;;  %v494_v13 = vld [vmem:[%s3252_s22 + $0x80] sm:$0xf] }
  0x21   : > { %v496_v14 = vld [vmem:[%s3252_s22 + $0x90] sm:$0xf]  ;;  %v498_v15 = vld [vmem:[%s3252_s22 + $0xa0] sm:$0xf]  ;;  %495 = vst [vmem:[%s3259_s20 + $0x20] sm:$0xf] %v494_v13 }
  0x22   : > { %497 = vst [vmem:[%s3259_s20 + $0x24] sm:$0xf] %v496_v14  ;;  %499 = vst [vmem:[%s3259_s20 + $0x28] sm:$0xf] %v498_v15  ;;  %v500_v16 = vld [vmem:[%s3252_s22 + $0xb0] sm:$0xf] }
  0x23   : > { %v502_v17 = vld [vmem:[%s3252_s22 + $0xc0] sm:$0xf]  ;;  %v504_v18 = vld [vmem:[%s3252_s22 + $0xd0] sm:$0xf]  ;;  %501 = vst [vmem:[%s3259_s20 + $0x2c] sm:$0xf] %v500_v16 }
  0x24   : > { %503 = vst [vmem:[%s3259_s20 + $0x30] sm:$0xf] %v502_v17  ;;  %505 = vst [vmem:[%s3259_s20 + $0x34] sm:$0xf] %v504_v18  ;;  %v506_v19 = vld [vmem:[%s3252_s22 + $0xe0] sm:$0xf] }
  0x25   : > { %v508_v20 = vld [vmem:[%s3252_s22 + $0xf0] sm:$0xf]  ;;  %v510_v21 = vld [vmem:[%s3252_s22 + $0x100] sm:$0xf]  ;;  %507 = vst [vmem:[%s3259_s20 + $0x38] sm:$0xf] %v506_v19 }
  0x26   : > { %509 = vst [vmem:[%s3259_s20 + $0x3c] sm:$0xf] %v508_v20  ;;  %511 = vst [vmem:[%s3259_s20 + $0x40] sm:$0xf] %v510_v21  ;;  %v512_v22 = vld [vmem:[%s3252_s22 + $0x110] sm:$0xf] }
  0x27   : > { %v514_v23 = vld [vmem:[%s3252_s22 + $0x120] sm:$0xf]  ;;  %v516_v24 = vld [vmem:[%s3252_s22 + $0x130] sm:$0xf]  ;;  %513 = vst [vmem:[%s3259_s20 + $0x44] sm:$0xf] %v512_v22 }
  0x28   : > { %515 = vst [vmem:[%s3259_s20 + $0x48] sm:$0xf] %v514_v23  ;;  %517 = vst [vmem:[%s3259_s20 + $0x4c] sm:$0xf] %v516_v24  ;;  %v518_v25 = vld [vmem:[%s3252_s22 + $0x140] sm:$0xf] }
  0x29   : > { %v520_v26 = vld [vmem:[%s3252_s22 + $0x150] sm:$0xf]  ;;  %v522_v27 = vld [vmem:[%s3252_s22 + $0x160] sm:$0xf]  ;;  %519 = vst [vmem:[%s3259_s20 + $0x50] sm:$0xf] %v518_v25 }
  0x2a   : > { %521 = vst [vmem:[%s3259_s20 + $0x54] sm:$0xf] %v520_v26  ;;  %523 = vst [vmem:[%s3259_s20 + $0x58] sm:$0xf] %v522_v27  ;;  %v524_v28 = vld [vmem:[%s3252_s22 + $0x170] sm:$0xf] }
  0x2b   : > { %v526_v29 = vld [vmem:[%s3252_s22 + $0x180] sm:$0xf]  ;;  %v528_v30 = vld [vmem:[%s3252_s22 + $0x190] sm:$0xf]  ;;  %525 = vst [vmem:[%s3259_s20 + $0x5c] sm:$0xf] %v524_v28 }
  0x2c   : > { %527 = vst [vmem:[%s3259_s20 + $0x60] sm:$0xf] %v526_v29  ;;  %529 = vst [vmem:[%s3259_s20 + $0x64] sm:$0xf] %v528_v30  ;;  %v530_v31 = vld [vmem:[%s3252_s22 + $0x1a0] sm:$0xf] }
  0x2d   : > { %v532_v32 = vld [vmem:[%s3252_s22 + $0x1b0] sm:$0xf]  ;;  %v534_v33 = vld [vmem:[%s3252_s22 + $0x1c0] sm:$0xf]  ;;  %531 = vst [vmem:[%s3259_s20 + $0x68] sm:$0xf] %v530_v31 }
  0x2e   : > { %533 = vst [vmem:[%s3259_s20 + $0x6c] sm:$0xf] %v532_v32  ;;  %535 = vst [vmem:[%s3259_s20 + $0x70] sm:$0xf] %v534_v33  ;;  %v536_v34 = vld [vmem:[%s3252_s22 + $0x1d0] sm:$0xf] }
  0x2f   : > { %v538_v35 = vld [vmem:[%s3252_s22 + $0x1e0] sm:$0xf]  ;;  %v540_v36 = vld [vmem:[%s3252_s22 + $0x1f0] sm:$0xf]  ;;  %537 = vst [vmem:[%s3259_s20 + $0x74] sm:$0xf] %v536_v34 }
  0x30   : > { %539 = vst [vmem:[%s3259_s20 + $0x78] sm:$0xf] %v538_v35  ;;  %541 = vst [vmem:[%s3259_s20 + $0x7c] sm:$0xf] %v540_v36  ;;  %v542_v37 = vld [vmem:[%s3252_s22 + $0x200] sm:$0xf] }
  0x31   : > { %v544_v38 = vld [vmem:[%s3252_s22 + $0x210] sm:$0xf]  ;;  %v546_v39 = vld [vmem:[%s3252_s22 + $0x220] sm:$0xf]  ;;  %543 = vst [vmem:[%s3259_s20 + $0x80] sm:$0xf] %v542_v37 }
  0x32   : > { %545 = vst [vmem:[%s3259_s20 + $0x84] sm:$0xf] %v544_v38  ;;  %547 = vst [vmem:[%s3259_s20 + $0x88] sm:$0xf] %v546_v39  ;;  %v548_v40 = vld [vmem:[%s3252_s22 + $0x230] sm:$0xf] }
  0x33   : > { %549 = vst [vmem:[%s3259_s20 + $0x8c] sm:$0xf] %v548_v40 }
  0x34 PF: > { %644 = sbr.rel (!%p3229_p4) target bundleno = 80 (0x50), region = 126  ;;  %s646_s23 = sand.u32 (%p3229_p4), 1, %s3122_s26  }
  0x35   : > { %s2633_s24 = sshll.u32 (%p3229_p4), %s3126_s27, 2  ;;  %s2947_s30 = smul.u32 (%p3229_p4), 144, %s646_s23 }
  0x36   : > { %s3335_s19 = scalar_lea.vmem (%p3229_p4), %s3889_s2, %s2633_s24 }
  0x37   : > { %v666_v41 = vld [vmem:[%s3335_s19] sm:$0xf] (%p3229_p4)  ;;  %v668_v42 = vld [vmem:[%s3335_s19 + $0x10] sm:$0xf] (%p3229_p4)  ;;  %s3342_s21 = scalar_lea.vmem (%p3229_p4), [#allocation4], %s2947_s30 }
  0x38   : > { %v670_v43 = vld [vmem:[%s3335_s19 + $0x20] sm:$0xf] (%p3229_p4)  ;;  %v672_v44 = vld [vmem:[%s3335_s19 + $0x30] sm:$0xf] (%p3229_p4)  ;;  %667 = vst [vmem:[%s3342_s21] sm:$0xf] (%p3229_p4), %v666_v41 }
  0x39   : > { %v674_v45 = vld [vmem:[%s3335_s19 + $0x40] sm:$0xf] (%p3229_p4)  ;;  %669 = vst [vmem:[%s3342_s21 + $0x4] sm:$0xf] (%p3229_p4), %v668_v42  ;;  %671 = vst [vmem:[%s3342_s21 + $0x8] sm:$0xf] (%p3229_p4), %v670_v43 }
  0x3a   : > { %673 = vst [vmem:[%s3342_s21 + $0xc] sm:$0xf] (%p3229_p4), %v672_v44  ;;  %675 = vst [vmem:[%s3342_s21 + $0x10] sm:$0xf] (%p3229_p4), %v674_v45  ;;  %v676_v46 = vld [vmem:[%s3335_s19 + $0x50] sm:$0xf] (%p3229_p4) }
  0x3b   : > { %v678_v47 = vld [vmem:[%s3335_s19 + $0x60] sm:$0xf]  ;;  %v680_v48 = vld [vmem:[%s3335_s19 + $0x70] sm:$0xf]  ;;  %677 = vst [vmem:[%s3342_s21 + $0x14] sm:$0xf] %v676_v46 }
  0x3c   : > { %679 = vst [vmem:[%s3342_s21 + $0x18] sm:$0xf] %v678_v47  ;;  %681 = vst [vmem:[%s3342_s21 + $0x1c] sm:$0xf] %v680_v48  ;;  %v682_v49 = vld [vmem:[%s3335_s19 + $0x80] sm:$0xf] }
  0x3d   : > { %v684_v50 = vld [vmem:[%s3335_s19 + $0x90] sm:$0xf]  ;;  %v686_v51 = vld [vmem:[%s3335_s19 + $0xa0] sm:$0xf]  ;;  %683 = vst [vmem:[%s3342_s21 + $0x20] sm:$0xf] %v682_v49 }
  0x3e   : > { %685 = vst [vmem:[%s3342_s21 + $0x24] sm:$0xf] %v684_v50  ;;  %687 = vst [vmem:[%s3342_s21 + $0x28] sm:$0xf] %v686_v51  ;;  %v688_v52 = vld [vmem:[%s3335_s19 + $0xb0] sm:$0xf] }
  0x3f   : > { %v690_v53 = vld [vmem:[%s3335_s19 + $0xc0] sm:$0xf]  ;;  %v692_v54 = vld [vmem:[%s3335_s19 + $0xd0] sm:$0xf]  ;;  %689 = vst [vmem:[%s3342_s21 + $0x2c] sm:$0xf] %v688_v52 }
  0x40   : > { %691 = vst [vmem:[%s3342_s21 + $0x30] sm:$0xf] %v690_v53  ;;  %693 = vst [vmem:[%s3342_s21 + $0x34] sm:$0xf] %v692_v54  ;;  %v694_v55 = vld [vmem:[%s3335_s19 + $0xe0] sm:$0xf] }
  0x41   : > { %v696_v56 = vld [vmem:[%s3335_s19 + $0xf0] sm:$0xf]  ;;  %v698_v57 = vld [vmem:[%s3335_s19 + $0x100] sm:$0xf]  ;;  %695 = vst [vmem:[%s3342_s21 + $0x38] sm:$0xf] %v694_v55 }
  0x42   : > { %697 = vst [vmem:[%s3342_s21 + $0x3c] sm:$0xf] %v696_v56  ;;  %699 = vst [vmem:[%s3342_s21 + $0x40] sm:$0xf] %v698_v57  ;;  %v700_v58 = vld [vmem:[%s3335_s19 + $0x110] sm:$0xf] }
  0x43   : > { %v702_v59 = vld [vmem:[%s3335_s19 + $0x120] sm:$0xf]  ;;  %v704_v60 = vld [vmem:[%s3335_s19 + $0x130] sm:$0xf]  ;;  %701 = vst [vmem:[%s3342_s21 + $0x44] sm:$0xf] %v700_v58 }
  0x44   : > { %703 = vst [vmem:[%s3342_s21 + $0x48] sm:$0xf] %v702_v59  ;;  %705 = vst [vmem:[%s3342_s21 + $0x4c] sm:$0xf] %v704_v60  ;;  %v706_v61 = vld [vmem:[%s3335_s19 + $0x140] sm:$0xf] }
  0x45   : > { %v708_v62 = vld [vmem:[%s3335_s19 + $0x150] sm:$0xf]  ;;  %v710_v63 = vld [vmem:[%s3335_s19 + $0x160] sm:$0xf]  ;;  %707 = vst [vmem:[%s3342_s21 + $0x50] sm:$0xf] %v706_v61 }
  0x46   : > { %709 = vst [vmem:[%s3342_s21 + $0x54] sm:$0xf] %v708_v62  ;;  %711 = vst [vmem:[%s3342_s21 + $0x58] sm:$0xf] %v710_v63  ;;  %v712_v0 = vld [vmem:[%s3335_s19 + $0x170] sm:$0xf] }
  0x47   : > { %v714_v1 = vld [vmem:[%s3335_s19 + $0x180] sm:$0xf]  ;;  %v716_v2 = vld [vmem:[%s3335_s19 + $0x190] sm:$0xf]  ;;  %713 = vst [vmem:[%s3342_s21 + $0x5c] sm:$0xf] %v712_v0 }
  0x48   : > { %715 = vst [vmem:[%s3342_s21 + $0x60] sm:$0xf] %v714_v1  ;;  %717 = vst [vmem:[%s3342_s21 + $0x64] sm:$0xf] %v716_v2  ;;  %v718_v3 = vld [vmem:[%s3335_s19 + $0x1a0] sm:$0xf] }
  0x49   : > { %v720_v4 = vld [vmem:[%s3335_s19 + $0x1b0] sm:$0xf]  ;;  %v722_v5 = vld [vmem:[%s3335_s19 + $0x1c0] sm:$0xf]  ;;  %719 = vst [vmem:[%s3342_s21 + $0x68] sm:$0xf] %v718_v3 }
  0x4a   : > { %721 = vst [vmem:[%s3342_s21 + $0x6c] sm:$0xf] %v720_v4  ;;  %723 = vst [vmem:[%s3342_s21 + $0x70] sm:$0xf] %v722_v5  ;;  %v724_v6 = vld [vmem:[%s3335_s19 + $0x1d0] sm:$0xf] }
  0x4b   : > { %v726_v7 = vld [vmem:[%s3335_s19 + $0x1e0] sm:$0xf]  ;;  %v728_v8 = vld [vmem:[%s3335_s19 + $0x1f0] sm:$0xf]  ;;  %725 = vst [vmem:[%s3342_s21 + $0x74] sm:$0xf] %v724_v6 }
  0x4c   : > { %727 = vst [vmem:[%s3342_s21 + $0x78] sm:$0xf] %v726_v7  ;;  %729 = vst [vmem:[%s3342_s21 + $0x7c] sm:$0xf] %v728_v8  ;;  %v730_v9 = vld [vmem:[%s3335_s19 + $0x200] sm:$0xf] }
  0x4d   : > { %v732_v10 = vld [vmem:[%s3335_s19 + $0x210] sm:$0xf]  ;;  %v734_v11 = vld [vmem:[%s3335_s19 + $0x220] sm:$0xf]  ;;  %731 = vst [vmem:[%s3342_s21 + $0x80] sm:$0xf] %v730_v9 }
  0x4e   : > { %733 = vst [vmem:[%s3342_s21 + $0x84] sm:$0xf] %v732_v10  ;;  %735 = vst [vmem:[%s3342_s21 + $0x88] sm:$0xf] %v734_v11  ;;  %v736_v12 = vld [vmem:[%s3335_s19 + $0x230] sm:$0xf] }
  0x4f   : > { %737 = vst [vmem:[%s3342_s21 + $0x8c] sm:$0xf] %v736_v12 }
  0x50 PF: > { %832 = sbr.rel (!%p3229_p4) target bundleno = 88 (0x58), region = 167  ;;  %s834_s22 = sand.u32 (%p3229_p4), 1, %s3122_s26  }
  0x51   : > { %s2635_s20 = sshll.u32 (%p3229_p4), %s3126_s27, 3  ;;  %s2634_s23 = sshll.u32 (%p3229_p4), %s834_s22, 5 }
  0x52   : > { %s838_s14 = scalar_lea.vmem (%p3229_p4), %s3896_s9, %s2635_s20  ;;  %s836_s18 = scalar_lea.vmem (%p3229_p4), [#allocation5], %s2634_s23 }
  0x53   : > { %v872_v13 = vld [vmem:[%s838_s14] sm:$0xff] (%p3229_p4) }
  0x54   : > { %v874_v14 = vld [vmem:[%s838_s14 + $0x20] sm:$0xff] (%p3229_p4)  ;;  %873 = vst [vmem:[%s836_s18] sm:$0xff] (%p3229_p4), %v872_v13 }
  0x55   : > { %v876_v15 = vld [vmem:[%s838_s14 + $0x40] sm:$0xff] (%p3229_p4)  ;;  %875 = vst [vmem:[%s836_s18 + $0x8] sm:$0xff] (%p3229_p4), %v874_v14 }
  0x56   : > { %877 = vst [vmem:[%s836_s18 + $0x10] sm:$0xff] (%p3229_p4), %v876_v15  ;;  %v878_v16 = vld [vmem:[%s838_s14 + $0x60] sm:$0xff] (%p3229_p4) }
  0x57   : > { %879 = vst [vmem:[%s836_s18 + $0x18] sm:$0xff] %v878_v16 }
  0x58 PF: > { %885 = sbr.rel (!%p3229_p4) target bundleno = 96 (0x60), region = 205  ;;  %s887_s19 = sand.u32 (%p3229_p4), 1, %s3122_s26  }
  0x59   : > { %s2637_s21 = sshll.u32 (%p3229_p4), %s3126_s27, 3  ;;  %s2636_s22 = sshll.u32 (%p3229_p4), %s887_s19, 5 }
  0x5a   : > { %s891_s30 = scalar_lea.vmem (%p3229_p4), %s3897_s10, %s2637_s21  ;;  %s889_s23 = scalar_lea.vmem (%p3229_p4), [#allocation6], %s2636_s22 }
  0x5b   : > { %v925_v17 = vld [vmem:[%s891_s30] sm:$0xff] (%p3229_p4) }
  0x5c   : > { %v927_v18 = vld [vmem:[%s891_s30 + $0x20] sm:$0xff] (%p3229_p4)  ;;  %926 = vst [vmem:[%s889_s23] sm:$0xff] (%p3229_p4), %v925_v17 }
  0x5d   : > { %v929_v19 = vld [vmem:[%s891_s30 + $0x40] sm:$0xff] (%p3229_p4)  ;;  %928 = vst [vmem:[%s889_s23 + $0x8] sm:$0xff] (%p3229_p4), %v927_v18 }
  0x5e   : > { %930 = vst [vmem:[%s889_s23 + $0x10] sm:$0xff] (%p3229_p4), %v929_v19  ;;  %v931_v20 = vld [vmem:[%s891_s30 + $0x60] sm:$0xff] (%p3229_p4) }
  0x5f   : > { %932 = vst [vmem:[%s889_s23 + $0x18] sm:$0xff] %v931_v20 }
  0x60 PF: > { %938 = sbr.rel (!%p3229_p4) target bundleno = 104 (0x68), region = 243  ;;  %s940_s14 = sand.u32 (%p3229_p4), 1, %s3122_s26  }
  0x61   : > { %s2639_s18 = sshll.u32 (%p3229_p4), %s3126_s27, 3  ;;  %s2638_s19 = sshll.u32 (%p3229_p4), %s940_s14, 5 }
  0x62   : > { %s944_s20 = scalar_lea.vmem (%p3229_p4), %s3898_s11, %s2639_s18  ;;  %s942_s22 = scalar_lea.vmem (%p3229_p4), [#allocation7], %s2638_s19 }
  0x63   : > { %v978_v21 = vld [vmem:[%s944_s20] sm:$0xff] (%p3229_p4) }
  0x64   : > { %v980_v22 = vld [vmem:[%s944_s20 + $0x20] sm:$0xff] (%p3229_p4)  ;;  %979 = vst [vmem:[%s942_s22] sm:$0xff] (%p3229_p4), %v978_v21 }
  0x65   : > { %v982_v23 = vld [vmem:[%s944_s20 + $0x40] sm:$0xff] (%p3229_p4)  ;;  %981 = vst [vmem:[%s942_s22 + $0x8] sm:$0xff] (%p3229_p4), %v980_v22 }
  0x66   : > { %983 = vst [vmem:[%s942_s22 + $0x10] sm:$0xff] (%p3229_p4), %v982_v23  ;;  %v984_v24 = vld [vmem:[%s944_s20 + $0x60] sm:$0xff] (%p3229_p4) }
  0x67   : > { %985 = vst [vmem:[%s942_s22 + $0x18] sm:$0xff] %v984_v24 }
  0x68 PF: > { %991 = sbr.rel (!%p3229_p4) target bundleno = 112 (0x70), region = 281  ;;  %s993_s30 = sand.u32 (%p3229_p4), 1, %s3122_s26  }
  0x69   : > { %s2641_s23 = sshll.u32 (%p3229_p4), %s3126_s27, 3  ;;  %s2640_s14 = sshll.u32 (%p3229_p4), %s993_s30, 5 }
  0x6a   : > { %s997_s21 = scalar_lea.vmem (%p3229_p4), %s3899_s12, %s2641_s23  ;;  %s995_s19 = scalar_lea.vmem (%p3229_p4), [#allocation8], %s2640_s14 }
  0x6b   : > { %v1031_v25 = vld [vmem:[%s997_s21] sm:$0xff] (%p3229_p4) }
  0x6c   : > { %v1033_v26 = vld [vmem:[%s997_s21 + $0x20] sm:$0xff] (%p3229_p4)  ;;  %1032 = vst [vmem:[%s995_s19] sm:$0xff] (%p3229_p4), %v1031_v25 }
  0x6d   : > { %v1035_v27 = vld [vmem:[%s997_s21 + $0x40] sm:$0xff] (%p3229_p4)  ;;  %1034 = vst [vmem:[%s995_s19 + $0x8] sm:$0xff] (%p3229_p4), %v1033_v26 }
  0x6e   : > { %1036 = vst [vmem:[%s995_s19 + $0x10] sm:$0xff] (%p3229_p4), %v1035_v27  ;;  %v1037_v28 = vld [vmem:[%s997_s21 + $0x60] sm:$0xff] (%p3229_p4) }
  0x6f   : > { %1038 = vst [vmem:[%s995_s19 + $0x18] sm:$0xff] %v1037_v28 }
  0x70 PF: > { %p2642_p7 = scmp.ge.s32.totalorder %s3126_s27, 1  ;;  %p1043_p8 = scmp.lt.s32.totalorder %s3126_s27, 5 }
  0x72   : > { %p1044_p9 = pnand %p2642_p7, %p1043_p8 }
  0x74   : > { %1047 = sbr.rel (%p1044_p9) target bundleno = 482 (0x1e2), region = 319 }
  0x7b   : > { %s3442_s16 = sand.u32 1, %s3118_s25   ;;  %v2982_v29 = vld [vmem:[%s3891_s4 + $0x8] ss:$12 sps:$4 sm:$0xff]   ;;  %vm1787_vm0 = vcmask 261120   ;;  %v2986_v30 = vld [vmem:[%s3890_s3] sm:$0xff]   ;;  %vm1331_vm1 = vcmask 293888  }
  0x7c   : > { %s2948_s20 = smul.u32 20, %s3442_s16  ;;  %2876 = vmatprep.mubr.msk.bf16.mxu0 %vm1787_vm0, %v2982_v29  ;;  %2856 = vmatprep.mubr.msk.bf16.mxu1 %vm1331_vm1, %v2986_v30  ;;  %v3128_v33 = vmov 0   ;;  %vm1356_vm2 = vcmask 1041408   ;;  %v2984_v38 = vld [vmem:[%s3891_s4 + $0x20] ss:$12 sps:$4 sm:$0xff]   ;;  %v2996_v50 = vld [vmem:[%s3890_s3 + $0x10] sm:$0xff]  }
  0x7d   : > { %s2949_s24 = smul.u32 144, %s3442_s16  ;;  %2975 = vset.pattern.permute.xlu0 %v3128_v33  ;;  %2976 = vset.pattern.permute.xlu1 %v3128_v33  ;;  %v2987_v41 = vld [vmem:[%s3890_s3 + $0x8] sm:$0xff]   ;;  %v2997_v51 = vld [vmem:[%s3890_s3 + $0x18] sm:$0xff]   ;;  %v3008_v62 = vld [vmem:[%s3890_s3 + $0x20] sm:$0xff]   ;;  %s3795_s22 = sshll.u32 %s3442_s16, 5 }
  0x7e   : > { %s1052_s18 = scalar_lea.vmem [#allocation2], %s2948_s20  ;;  %v3002_v56 = vld [vmem:[%s3891_s4 + $0x38] ss:$12 sps:$4 sm:$0xff]   ;;  %v3004_v58 = vld [vmem:[%s3891_s4 + $0x50] ss:$12 sps:$4 sm:$0xff]   ;;  %v3009_v63 = vld [vmem:[%s3890_s3 + $0x28] sm:$0xff]  }
  0x7f   : > { %v2977_v31 = vld [vmem:[%s1052_s18] sm:$0xff]   ;;  %s3454_s25 = scalar_lea.vmem [#allocation3], %s2949_s24  ;;  %v2979_v34 = vld [vmem:[%s1052_s18 + $0x8] sm:$0xff]   ;;  %v2981_v36 = vld [vmem:[%s1052_s18 + $0x10] ss:$0 sps:$4 sm:$0x33]  }
  0x80   : > { %v2978_v32 = vld [vmem:[%s3454_s25 + $0x80] sm:$0xff]   ;;  %2850 = vmatprep.subr.bf16.mxu1 %v2977_v31  ;;  %v2980_v35 = vld [vmem:[%s3454_s25 + $0x88] sm:$0xff]   ;;  %s3458_s21 = scalar_lea.vmem [#allocation4], %s2949_s24  ;;  %v1358_v40 = vsel %vm1356_vm2, %v2981_v36, 0  ;;  %v2998_v52 = vld [vmem:[%s3454_s25 + $0x50] sm:$0xff]   ;;  %s1080_s16 = scalar_lea.vmem [#allocation6], %s3795_s22 }
  0x81   : > { %2872 = vmatprep.subr.bf16.mxu0 %v2978_v32  ;;  %2851 = vmatpush3.bf16.msra.mxu1 %v2977_v31  ;;  %v2983_v37 = vld [vmem:[%s3458_s21 + $0x40] sm:$0xff]   ;;  %v2989_v43 = vld [vmem:[%s3458_s21 + $0x48] sm:$0xff]   ;;  %v2993_v47 = vld [vmem:[%s3458_s21 + $0x50] sm:$0xff]   ;;  %s1087_s30 = scalar_lea.vmem [#allocation7], %s3795_s22  ;;  %s3863_s23 = scalar_lea.vmem [#allocation5], %s3795_s22 }
  0x82   : > { %2873 = vmatpush3.bf16.msra.mxu0 %v2978_v32  ;;  %2852 = vmatprep.subr.bf16.mxu1 %v2979_v34  ;;  %v2985_v39 = vld [vmem:[%s3458_s21] sm:$0xff]   ;;  %v2991_v45 = vld [vmem:[%s3458_s21 + $0x8] sm:$0xff]   ;;  %v2995_v49 = vld [vmem:[%s3458_s21 + $0x10] sm:$0xff]   ;;  %s1157_s14 = scalar_lea.vmem [#allocation9], %s3795_s22  ;;  %s2744_s24 = sshll.u32 (%p3233_p5), %s2627_s28, 3 }
  0x83   : > { %2874 = vmatprep.subr.bf16.mxu0 %v2980_v35  ;;  %v2988_v42 = vld [vmem:[%s3454_s25 + $0x40] sm:$0xff]   ;;  %v2992_v46 = vld [vmem:[%s3454_s25 + $0x48] sm:$0xff]   ;;  %v2999_v53 = vld [vmem:[%s3458_s21 + $0x58] sm:$0xff]   ;;  %s2418_s20 = scalar_lea.vmem (%p3233_p5), %s3900_s13, %s2744_s24 }
  0x84   : > { %v2990_v44 = vld [vmem:[%s3454_s25] sm:$0xff]   ;;  %v2994_v48 = vld [vmem:[%s3454_s25 + $0x8] sm:$0xff]   ;;  %v3000_v54 = vld [vmem:[%s3454_s25 + $0x10] sm:$0xff]  }
  0x85   : > { %2853 = vmatpush3.bf16.msra.mxu1 %v2979_v34  ;;  %v3001_v55 = vld [vmem:[%s3458_s21 + $0x18] sm:$0xff]   ;;  %v3005_v59 = vld [vmem:[%s3458_s21 + $0x60] sm:$0xff]   ;;  %v3011_v1 = vld [vmem:[%s3458_s21 + $0x68] sm:$0xff]  }
  0x86   : > { %2875 = vmatpush3.bf16.msra.mxu0 %v2980_v35  ;;  %2944 = vmatprep.subr.msk.bf16.mxu1 %vm1356_vm2, %v2981_v36  ;;  %v3003_v57 = vld [vmem:[%s3454_s25 + $0x58] sm:$0xff]   ;;  %v3007_v61 = vld [vmem:[%s3458_s21 + $0x20] sm:$0xff]   ;;  %v3013_v3 = vld [vmem:[%s3458_s21 + $0x28] sm:$0xff]  }
  0x87   : > { %2818 = vmatprep.subr.bf16.mxu0 %v2983_v37  ;;  %v3006_v60 = vld [vmem:[%s3454_s25 + $0x18] sm:$0xff]   ;;  %v3010_v0 = vld [vmem:[%s3454_s25 + $0x60] sm:$0xff]   ;;  %v3015_v5 = vld [vmem:[%s3454_s25 + $0x68] sm:$0xff]  }
  0x88   : > { %v3012_v2 = vld [vmem:[%s3454_s25 + $0x20] sm:$0xff]   ;;  %v3017_v7 = vld [vmem:[%s3458_s21 + $0x70] sm:$0xff]   ;;  %v3018_v8 = vld [vmem:[%s3454_s25 + $0x28] sm:$0xff]  }
  0x89   : > { %2855 = vmatpush3.bf16.msra.mxu1 %v1358_v40  ;;  %2877 = vmatmul.mubr.msk.bf16.vlgmr.msra.gmra.mrb[0].mxu0 %vm1787_vm0, %v2984_v38  ;;  %v3014_v4 = vld [vmem:[%s3891_s4 + $0x68] ss:$12 sps:$4 sm:$0xff]   ;;  %v3016_v6 = vld [vmem:[%s3891_s4 + $0x80] ss:$12 sps:$4 sm:$0xff]   ;;  %v3021_v11 = vld [vmem:[%s3890_s3 + $0x38] sm:$0xff]  }
  0x8a   : > { %2819 = vmatpush3.bf16.msra.mxu0 %v2985_v39  ;;  %2758 = vmatprep.subr.bf16.mxu1 %v2988_v42  ;;  %v3019_v9 = vld [vmem:[%s3458_s21 + $0x30] sm:$0xff]   ;;  %v3020_v10 = vld [vmem:[%s3890_s3 + $0x30] sm:$0xff]   ;;  %v3037_v23 = vld [vmem:[%s3458_s21 + $0x80] sm:$0xff]  }
  0x8b   : > { %2820 = vmatprep.subr.bf16.mxu0 %v2989_v43  ;;  %2880 = vmatprep.mubr.msk.bf16.mxu0 %vm1787_vm0, %v3002_v56  ;;  %v3022_v12 = vld [vmem:[%s3454_s25 + $0x70] sm:$0xff]   ;;  %v3023_v13 = vld [vmem:[%s3458_s21 + $0x78] sm:$0xff]   ;;  %v3041_v26 = vld [vmem:[%s3458_s21 + $0x88] sm:$0xff]  }
  0x8c   : > { %2857 = vmatmul.mubr.msk.bf16.vlgmr.msra.gmra.mrb[0].mxu1 %vm1331_vm1, %v2987_v41  ;;  %v3024_v14 = vld [vmem:[%s3454_s25 + $0x30] sm:$0xff]   ;;  %v3025_v15 = vld [vmem:[%s3458_s21 + $0x38] sm:$0xff]   ;;  %s3832_s21 = scalar_lea.vmem [#allocation8], %s3795_s22 }
  0x8d   : > { %2759 = vmatpush3.bf16.msra.mxu1 %v2990_v44  ;;  %2860 = vmatprep.mubr.msk.bf16.mxu1 %vm1331_vm1, %v2996_v50  ;;  %v3026_v16 = vld [vmem:[%s3892_s5] ss:$12 sps:$4 sm:$0xff]   ;;  %v3028_v17 = vld [vmem:[%s3892_s5 + $0x4] ss:$12 sps:$4 sm:$0xff]   ;;  %v3034_v22 = vld [vmem:[%s3892_s5 + $0x1c] ss:$12 sps:$4 sm:$0xff]  }
  0x8e   : > { %2821 = vmatpush3.bf16.msra.mxu0 %v2991_v45  ;;  %2760 = vmatprep.subr.bf16.mxu1 %v2992_v46  ;;  %v3029_v18 = vld [vmem:[%s3454_s25 + $0x78] sm:$0xff]   ;;  %v3038_v25 = vld [vmem:[%s3891_s4 + $0x1c] ss:$12 sps:$4 sm:$0xff]   ;;  %v3047_v38 = vld [vmem:[%s3891_s4 + $0x4c] ss:$12 sps:$4 sm:$0xff]  }
  0x8f   : > { %2822 = vmatprep.subr.bf16.mxu0 %v2993_v47  ;;  %v3030_v19 = vld [vmem:[%s3454_s25 + $0x38] sm:$0xff]   ;;  %v1181_v32 = vld [vmem:[%s3893_s6 + $0x8] sm:$0xff]  ;;  %v1183_v33 = vld [vmem:[%s3893_s6 + $0x18] sm:$0xff] }
  0x90   : > { %v3031_v20 = vld [vmem:[%s3891_s4] ss:$12 sps:$4 sm:$0xff]   ;;  %v3033_v21 = vld [vmem:[%s3891_s4 + $0x4] ss:$12 sps:$4 sm:$0xff]   ;;  %v3042_v27 = vld [vmem:[%s3892_s5 + $0x8] ss:$12 sps:$4 sm:$0xff]  }
  0x91   : > { %2761 = vmatpush3.bf16.msra.mxu1 %v2994_v48  ;;  %2881 = vmatmul.mubr.msk.bf16.gmra.mrb[4].mxu0 %vm1787_vm0, %v3004_v58  ;;  %v3036_v24 = vld [vmem:[%s3892_s5 + $0x18] ss:$12 sps:$4 sm:$0xff]   ;;  %v3044_v29 = vld [vmem:[%s3891_s4 + $0x34] ss:$12 sps:$4 sm:$0xff]   ;;  %v3046_v35 = vld [vmem:[%s3891_s4 + $0x30] ss:$12 sps:$4 sm:$0xff]  }
  0x92   : > { %2823 = vmatpush3.bf16.msra.mxu0 %v2995_v49  ;;  %2762 = vmatprep.subr.bf16.mxu1 %v2998_v52  ;;  %v3040_v28 = vld [vmem:[%s3891_s4 + $0x18] ss:$12 sps:$4 sm:$0xff]   ;;  %v1182_v31 = vld [vmem:[%s3893_s6 + $0x10] sm:$0xff]  ;;  %v3043_v34 = vld [vmem:[%s3892_s5 + $0x20] ss:$12 sps:$4 sm:$0xff]  }
  0x93   : > { %2824 = vmatprep.subr.bf16.mxu0 %v2999_v53  ;;  %2884 = vmatprep.mubr.msk.bf16.mxu0 %vm1787_vm0, %v3014_v4  ;;  %v1180_v30 = vld [vmem:[%s3893_s6] sm:$0xff]  ;;  %v1193_v39 = vld [vmem:[%s3893_s6 + $0x68] sm:$0xff]  ;;  %v1194_v40 = vld [vmem:[%s3893_s6 + $0x70] sm:$0xff] }
  0x94   : > { %2861 = vmatmul.mubr.msk.bf16.gmra.mrb[4].mxu1 %vm1331_vm1, %v2997_v51  ;;  %1198 = vperm.xlu0 %2975, %v1180_v30   ;;  %v1184_v36 = vld [vmem:[%s3893_s6 + $0x20] sm:$0xff]  ;;  %v3049_v41 = vld [vmem:[%s3891_s4 + $0x48] ss:$12 sps:$4 sm:$0xff]   ;;  %v1195_v42 = vld [vmem:[%s3893_s6 + $0x78] sm:$0xff] }
  0x95   : > { %2763 = vmatpush3.bf16.msra.mxu1 %v3000_v54  ;;  %2864 = vmatprep.mubr.msk.bf16.mxu1 %vm1331_vm1, %v3008_v62  ;;  %v1192_v37 = vld [vmem:[%s3893_s6 + $0x60] sm:$0xff]  ;;  %v1526_v45 = vld [vmem:[%s3894_s7 + $0x48] sm:$0xff]  ;;  %v1527_v46 = vld [vmem:[%s3894_s7 + $0x50] sm:$0xff] }
  0x96   : > { %2825 = vmatpush3.bf16.msra.mxu0 %v3001_v55  ;;  %2764 = vmatprep.subr.bf16.mxu1 %v3003_v57  ;;  %v1525_v43 = vld [vmem:[%s3894_s7 + $0x40] sm:$0xff]  ;;  %v1528_v48 = vld [vmem:[%s3894_s7 + $0x58] sm:$0xff]  ;;  %v1189_v51 = vld [vmem:[%s3893_s6 + $0x48] sm:$0xff] }
  0x97   : > { %2826 = vmatprep.subr.bf16.mxu0 %v3005_v59  ;;  %1208 = vperm.xlu1 %2976, %v1182_v31   ;;  %v3050_v44 = vld [vmem:[%s3891_s4 + $0x64] ss:$12 sps:$4 sm:$0xff]   ;;  %v3052_v47 = vld [vmem:[%s3891_s4 + $0x60] ss:$12 sps:$4 sm:$0xff]   ;;  %v3053_v50 = vld [vmem:[%s3891_s4 + $0x7c] ss:$12 sps:$4 sm:$0xff]  }
  0x98   : > { %1203 = vperm.xlu0 %2975, %v1181_v32   ;;  %v1188_v49 = vld [vmem:[%s3893_s6 + $0x40] sm:$0xff]  ;;  %v1190_v52 = vld [vmem:[%s3893_s6 + $0x50] sm:$0xff]  ;;  %v1191_v54 = vld [vmem:[%s3893_s6 + $0x58] sm:$0xff] }
  0x99   : > { %2765 = vmatpush3.bf16.msra.mxu1 %v3006_v60  ;;  %2885 = vmatmul.mubr.msk.bf16.gmra.mrb[8].mxu0 %vm1787_vm0, %v3016_v6  ;;  %v3055_v53 = vld [vmem:[%s3891_s4 + $0x78] ss:$12 sps:$4 sm:$0xff]   ;;  %v1522_v56 = vld [vmem:[%s3894_s7 + $0x28] sm:$0xff]  ;;  %v1523_v57 = vld [vmem:[%s3894_s7 + $0x30] sm:$0xff] }
  0x9a   : > { %2827 = vmatpush3.bf16.msra.mxu0 %v3007_v61  ;;  %2766 = vmatprep.subr.bf16.mxu1 %v3010_v0  ;;  %v1521_v55 = vld [vmem:[%s3894_s7 + $0x20] sm:$0xff]  ;;  %v1524_v58 = vld [vmem:[%s3894_s7 + $0x38] sm:$0xff]  ;;  %v1185_v59 = vld [vmem:[%s3893_s6 + $0x28] sm:$0xff] }
  0x9b   : > { %2828 = vmatprep.subr.bf16.mxu0 %v3011_v1  ;;  %2212 = vmatprep.mubr.bf16.mxu0 %v3028_v17  ;;  %v1186_v60 = vld [vmem:[%s3893_s6 + $0x30] sm:$0xff]  ;;  %v1187_v61 = vld [vmem:[%s3893_s6 + $0x38] sm:$0xff]  ;;  %v2013_v62 = vld [vmem:[%s3895_s8 + $0x8] sm:$0xff] }
  0x9c   : > { %2865 = vmatmul.mubr.msk.bf16.gmra.mrb[8].mxu1 %vm1331_vm1, %v3009_v63  ;;  %1213 = vperm.xlu1 %2976, %v1183_v33   ;;  %v2012_v63 = vld [vmem:[%s3895_s8] sm:$0xff]  ;;  %v2015_v0 = vld [vmem:[%s3895_s8 + $0x18] sm:$0xff]  ;;  %v2014_v1 = vld [vmem:[%s3895_s8 + $0x10] sm:$0xff] }
  0x9d   : > { %2767 = vmatpush3.bf16.msra.mxu1 %v3012_v2  ;;  %2868 = vmatprep.mubr.msk.bf16.mxu1 %vm1331_vm1, %v3020_v10  ;;  %v1518_v2 = vld [vmem:[%s3894_s7 + $0x8] sm:$0xff]  ;;  %v1520_v4 = vld [vmem:[%s3894_s7 + $0x18] sm:$0xff] }
  0x9e   : > { %2829 = vmatpush3.bf16.msra.mxu0 %v3013_v3  ;;  %2768 = vmatprep.subr.bf16.mxu1 %v3015_v5  ;;  %v1517_v3 = vld [vmem:[%s3894_s7] sm:$0xff]  ;;  %v1519_v5 = vld [vmem:[%s3894_s7 + $0x10] sm:$0xff] }
  0x9f   : > { %2830 = vmatprep.subr.bf16.mxu0 %v3017_v7  ;;  %1218 = vperm.xlu0 %2975, %v1184_v36  }
  0xa0   : > { %1258 = vperm.xlu1 %2976, %v1192_v37  }
  0xa1   : > { %2769 = vmatpush3.bf16.msra.mxu1 %v3018_v8 }
  0xa2   : > { %2831 = vmatpush3.bf16.msra.mxu0 %v3019_v9  ;;  %2770 = vmatprep.subr.bf16.mxu1 %v3022_v12 }
  0xa3   : > { %2832 = vmatprep.subr.bf16.mxu0 %v3023_v13  ;;  %1263 = vperm.xlu0 %2975, %v1193_v39  }
  0xa4   : > { %2869 = vmatmul.mubr.msk.bf16.gmra.mrb[12].mxu1 %vm1331_vm1, %v3021_v11  ;;  %1268 = vperm.xlu1 %2976, %v1194_v40  }
  0xa5   : > { %2771 = vmatpush3.bf16.msra.mxu1 %v3024_v14  ;;  %1838 = vmatprep.mubr.bf16.mxu1 %v3033_v21 }
  0xa6   : > { %2833 = vmatpush3.bf16.msra.mxu0 %v3025_v15  ;;  %2772 = vmatprep.subr.bf16.mxu1 %v3029_v18 }
  0xa7   : > { %2888 = vmatprep.subr.bf16.mxu0 %v3037_v23  ;;  %1273 = vperm.xlu0 %2975, %v1195_v42  }
  0xa8   : > { %1571 = vperm.xlu1 %2976, %v1525_v43  }
  0xa9   : > { %2213 = vmatmul.mubr.bf16.vlgmr.msra.gmra.mrb[12].mxu0 %v3026_v16  ;;  %2773 = vmatpush3.bf16.msra.mxu1 %v3030_v19 }
  0xaa   : > { %2220 = vmatprep.mubr.bf16.mxu0 %v3034_v22  ;;  %2889 = vmatpush3.bf16.msra.mxu0 %v3037_v23 }
  0xab   : > { %2890 = vmatprep.subr.bf16.mxu0 %v3041_v26  ;;  %1576 = vperm.xlu0 %2975, %v1526_v45  }
  0xac   : > { %1839 = vmatmul.mubr.bf16.vlgmr.msra.gmra.mrb[16].mxu1 %v3031_v20  ;;  %1581 = vperm.xlu1 %2976, %v1527_v46  }
  0xad   : > { %1846 = vmatprep.mubr.bf16.mxu1 %v3038_v25 }
  0xae   : > { %2891 = vmatpush3.bf16.msra.mxu0 %v3041_v26 }
  0xaf   : > { %1586 = vperm.xlu0 %2975, %v1528_v48  }
  0xb0   : > { %1238 = vperm.xlu1 %2976, %v1188_v49  }
  0xb1   : > { %2221 = vmatmul.mubr.bf16.gmra.mrb[16].mxu0 %v3036_v24 }
  0xb2   : > { %2892 = vmatprep.mubr.msk.bf16.mxu0 %vm1787_vm0, %v3042_v27 }
  0xb3   : > { %1243 = vperm.xlu0 %2975, %v1189_v51  }
  0xb4   : > { %1847 = vmatmul.mubr.bf16.gmra.mrb[20].mxu1 %v3040_v28  ;;  %1248 = vperm.xlu1 %2976, %v1190_v52  }
  0xb5   : > { %1854 = vmatprep.mubr.bf16.mxu1 %v3044_v29 }
  0xb7   : > { %1253 = vperm.xlu0 %2975, %v1191_v54  }
  0xb8   : > { %1551 = vperm.xlu1 %2976, %v1521_v55  }
  0xb9   : > { %2893 = vmatmul.mubr.msk.bf16.vlgmr.msra.gmra.mrb[20].mxu0 %vm1787_vm0, %v3043_v34 }
  0xbb   : > { %1556 = vperm.xlu0 %2975, %v1522_v56  }
  0xbc   : > { %1855 = vmatmul.mubr.bf16.gmra.mrb[24].mxu1 %v3046_v35  ;;  %1561 = vperm.xlu1 %2976, %v1523_v57  }
  0xbd   : > { %1862 = vmatprep.mubr.bf16.mxu1 %v3047_v38 }
  0xbf   : > { %1566 = vperm.xlu0 %2975, %v1524_v58  }
  0xc0   : > { %1223 = vperm.xlu1 %2976, %v1185_v59  }
  0xc3   : > { %1228 = vperm.xlu0 %2975, %v1186_v60  }
  0xc4   : > { %1863 = vmatmul.mubr.bf16.gmra.mrb[28].mxu1 %v3049_v41  ;;  %1233 = vperm.xlu1 %2976, %v1187_v61  }
  0xc5   : > { %1870 = vmatprep.mubr.bf16.mxu1 %v3050_v44 }
  0xc7   : > { %2018 = vperm.xlu0 %2975, %v2012_v63  }
  0xc8   : > { %2023 = vperm.xlu1 %2976, %v2013_v62  }
  0xcb   : > { %2028 = vperm.xlu0 %2975, %v2014_v1  }
  0xcc   : > { %1871 = vmatmul.mubr.bf16.gmra.mrb[32].mxu1 %v3052_v47  ;;  %2033 = vperm.xlu1 %2976, %v2015_v0  }
  0xcd   : > { %1878 = vmatprep.mubr.bf16.mxu1 %v3053_v50 }
  0xcf   : > { %1531 = vperm.xlu0 %2975, %v1517_v3  }
  0xd0   : > { %1536 = vperm.xlu1 %2976, %v1518_v2  }
  0xd3   : > { %1541 = vperm.xlu0 %2975, %v1519_v5  }
  0xd4   : > { %1879 = vmatmul.mubr.bf16.gmra.mrb[36].mxu1 %v3055_v53  ;;  %1546 = vperm.xlu1 %2976, %v1520_v4  }
 0x113   : > { %v3694_v6 = vpop.permute.xlu0 %1198 }
 0x116   : > { %v3696_v7 = vpop.permute.xlu1 %1208 }
 0x117   : > { %v3698_v8 = vpop.permute.xlu0 %1203 }
 0x11b   : > { %v3700_v9 = vpop.permute.xlu1 %1213 }
 0x11e   : > { %v1219_v10 = vpop.permute.xlu0 %1218 }
 0x11f   : > { %v3702_v11 = vpop.permute.xlu1 %1258 }
 0x122   : > { %v3704_v12 = vpop.permute.xlu0 %1263 }
 0x123   : > { %3903 = vst [vmem:[#allocation10_spill] sm:$0xff] %v3704_v12  ;;  %v3706_v13 = vpop.permute.xlu1 %1268 }
 0x124   : > { %3904 = vst [vmem:[#allocation11_spill] sm:$0xff] %v3706_v13 }
 0x126   : > { %v3708_v14 = vpop.permute.xlu0 %1273 }
 0x127   : > { %3905 = vst [vmem:[#allocation12_spill] sm:$0xff] %v3708_v14  ;;  %v3710_v15 = vpop.permute.xlu1 %1571 }
 0x128   : > { %3906 = vst [vmem:[#allocation13_spill] sm:$0xff] %v3710_v15 }
 0x12a   : > { %v3712_v16 = vpop.permute.xlu0 %1576 }
 0x12b   : > { %3907 = vst [vmem:[#allocation14_spill] sm:$0xff] %v3712_v16  ;;  %v3714_v17 = vpop.permute.xlu1 %1581 }
 0x12c   : > { %3908 = vst [vmem:[#allocation15_spill] sm:$0xff] %v3714_v17 }
 0x12e   : > { %v3716_v18 = vpop.permute.xlu0 %1586 }
 0x12f   : > { %3909 = vst [vmem:[#allocation16_spill] sm:$0xff] %v3716_v18  ;;  %v3722_v21 = vpop.permute.xlu1 %1238 }
 0x132   : > { %v3732_v27 = vpop.permute.xlu0 %1243 }
 0x133   : > { %v3734_v29 = vpop.permute.xlu1 %1248 }
 0x136   : > { %v3738_v31 = vpop.permute.xlu0 %1253 }
 0x137   : > { %v3742_v34 = vpop.permute.xlu1 %1551 }
 0x13a   : > { %v3748_v38 = vpop.permute.xlu0 %1556 }
 0x13b   : > { %v3754_v41 = vpop.permute.xlu1 %1561 }
 0x13e   : > { %v3762_v45 = vpop.permute.xlu0 %1566 }
 0x13f   : > { %v1224_v47 = vpop.permute.xlu1 %1223 }
 0x142   : > { %v1229_v50 = vpop.permute.xlu0 %1228 }
 0x143   : > { %v1234_v53 = vpop.permute.xlu1 %1233 }
 0x146   : > { %v2019_v55 = vpop.permute.xlu0 %2018 }
 0x147   : > { %v2024_v58 = vpop.permute.xlu1 %2023 }
 0x14a   : > { %v2029_v61 = vpop.permute.xlu0 %2028 }
 0x14b   : > { %v2034_v63 = vpop.permute.xlu1 %2033 }
 0x14f   : > { %v1537_v12 = vpop.permute.xlu1 %1536 }
 0x15c   : > { %v3718_v19 = vpop.f32.mrb[0].mxu0 }
 0x15d   : > { %v3720_v20 = vpop.f32.mrb[1].mxu0 }
 0x15e   : > { %v3726_v23 = vpop.f32.mrb[2].mxu0 }
 0x15f   : > { %v3724_v22 = vpop.f32.mrb[0].mxu1  ;;  %v3728_v25 = vpop.f32.mrb[3].mxu0 }
 0x160   : > { %v1394_v24 = vpop.f32.mrb[1].mxu1 }
 0x161   : > { %v3730_v26 = vpop.f32.mrb[2].mxu1 }
 0x162   : > { %v1397_v28 = vpop.f32.mrb[3].mxu1 }
 0x163   : > { %v1398_v15 = vadd.f32 %v1397_v28, %v3698_v8 }
 0x164   : > { %v3744_v36 = vpop.f32.mrb[4].mxu0 }
 0x165   : > { %v3746_v37 = vpop.f32.mrb[5].mxu0 }
 0x166   : > { %v3750_v39 = vpop.f32.mrb[6].mxu0 }
 0x167   : > { %v3736_v30 = vpop.f32.mrb[4].mxu1  ;;  %v3752_v40 = vpop.f32.mrb[7].mxu0 }
 0x168   : > { %v1410_v32 = vpop.f32.mrb[5].mxu1 }
 0x169   : > { %v3740_v33 = vpop.f32.mrb[6].mxu1  ;;  %v1411_v4 = vadd.f32 %v1410_v32, %v1219_v10 }
 0x16a   : > { %v1413_v35 = vpop.f32.mrb[7].mxu1 }
 0x16b   : > { %v1414_v17 = vadd.f32 %v1413_v35, %v1224_v47 }
 0x16c   : > { %v3766_v48 = vpop.f32.mrb[8].mxu0 }
 0x16d   : > { %3910 = vst [vmem:[#allocation17_spill] sm:$0xff] %v3766_v48  ;;  %v3768_v49 = vpop.f32.mrb[9].mxu0 }
 0x16e   : > { %3911 = vst [vmem:[#allocation18_spill] sm:$0xff] %v3768_v49  ;;  %v3770_v51 = vpop.f32.mrb[10].mxu0  ;;  %v1395_v49 = vadd.f32 %v1394_v24, %v3694_v6  ;;  %v1419_v6 = vadd.f32 %v3736_v30, %v1229_v50  ;;  %v1547_v30 = vpop.permute.xlu1 %1546 }
 0x16f   : > { %v3756_v42 = vpop.f32.mrb[8].mxu1  ;;  %3912 = vst [vmem:[#allocation19_spill] sm:$0xff] %v3770_v51  ;;  %v3772_v52 = vpop.f32.mrb[11].mxu0 }
 0x170   : > { %v3758_v43 = vpop.f32.mrb[9].mxu1  ;;  %3913 = vst [vmem:[#allocation20_spill] sm:$0xff] %v3772_v52 }
 0x171   : > { %v3760_v44 = vpop.f32.mrb[10].mxu1 }
 0x172   : > { %v3764_v46 = vpop.f32.mrb[11].mxu1 }
 0x177   : > { %v3774_v54 = vpop.f32.mrb[12].mxu1 }
 0x178   : > { %3914 = vst [vmem:[#allocation21_spill] sm:$0xff] %v3774_v54  ;;  %v3776_v56 = vpop.f32.mrb[13].mxu1 }
 0x179   : > { %v3778_v57 = vpop.f32.mrb[14].mxu1 }
 0x17a   : > { %3915 = vst [vmem:[#allocation22_spill] sm:$0xff] %v3778_v57  ;;  %v3780_v59 = vpop.f32.mrb[15].mxu1  ;;  %v1532_v57 = vpop.permute.xlu0 %1531 }
 0x17b   : > { %3916 = vst [vmem:[#allocation23_spill] sm:$0xff] %v3780_v59 }
 0x17c   : > { %v2834_v60 = vpop.f32.mrb[12].mxu0 }
 0x17d   : > { %v2835_v62 = vpop.f32.mrb[13].mxu0 }
 0x17e   : > { %v2836_v0 = vadd.f32 %v2835_v62, %v2834_v60  ;;  %v2837_v1 = vpop.f32.mrb[14].mxu0  ;;  %v1542_v24 = vpop.permute.xlu0 %1541 }
 0x17f   : > { %v2838_v2 = vpop.f32.mrb[15].mxu0  ;;  %v2774_v3 = vpop.f32.mrb[16].mxu1 }
 0x180   : > { %v2215_v5 = vadd.f32 %v2836_v0, %v2019_v55  ;;  %v2839_v51 = vadd.f32 %v2838_v2, %v2837_v1  ;;  %v2775_v48 = vpop.f32.mrb[17].mxu1 }
 0x181   : > { %v2776_v18 = vadd.f32 %v2775_v48, %v2774_v3  ;;  %v2777_v14 = vpop.f32.mrb[18].mxu1 }
 0x182   : > { %v2218_v54 = vadd.f32 %v2839_v51, %v2024_v58  ;;  %v2778_v13 = vpop.f32.mrb[19].mxu1  ;;  %v2912_v52 = vadd.f32 %v2215_v5, %v1411_v4 }
 0x183   : > { %v1841_v16 = vadd.f32 %v2776_v18, %v1532_v57  ;;  %v2779_v59 = vadd.f32 %v2778_v13, %v2777_v14 }
 0x184   : > { %v2840_v60 = vpop.f32.mrb[16].mxu0  ;;  %v2918_v62 = vadd.f32 %v2218_v54, %v1414_v17 }
 0x185   : > { %v2900_v10 = vadd.f32 %v1841_v16, %v1395_v49  ;;  %v1844_v32 = vadd.f32 %v2779_v59, %v1537_v12  ;;  %v2841_v55 = vpop.f32.mrb[17].mxu0  ;;  %v1422_v16 = vadd.f32 %v3740_v33, %v1234_v53 }
 0x186   : > { %v2842_v0 = vadd.f32 %v2841_v55, %v2840_v60  ;;  %v2843_v48 = vpop.f32.mrb[18].mxu0  ;;  %v2290_v55 = vld [vmem:[%s1087_s30] sm:$0xff] }
 0x187   : > { %v3785_v35 = vadd.f32 %v2900_v10, %v3720_v20  ;;  %v2906_v47 = vadd.f32 %v1844_v32, %v1398_v15  ;;  %v2844_v51 = vpop.f32.mrb[19].mxu0  ;;  %v2780_v58 = vpop.f32.mrb[20].mxu1  ;;  %v1403_v15 = vadd.f32 %v3724_v22, %v3696_v7 }
 0x188   : > { %v2223_v13 = vadd.f32 %v2842_v0, %v2029_v61  ;;  %v2845_v14 = vadd.f32 %v2844_v51, %v2843_v48  ;;  %v2781_v18 = vpop.f32.mrb[21].mxu1  ;;  %v2283_v51 = vld [vmem:[%s1080_s16 + $0x8] sm:$0xff] }
 0x189   : > { %v3789_v17 = vadd.f32 %v2906_v47, %v3728_v25  ;;  %v2782_v8 = vadd.f32 %v2781_v18, %v2780_v58  ;;  %v2783_v12 = vpop.f32.mrb[22].mxu1  ;;  %v1406_v25 = vadd.f32 %v3730_v26, %v3700_v9  ;;  %v1430_v58 = vadd.f32 %v3764_v46, %v3732_v27 }
 0x18a   : > { %v2226_v28 = vadd.f32 %v2845_v14, %v2034_v63  ;;  %v2784_v20 = vpop.f32.mrb[23].mxu1  ;;  %v2909_v49 = vadd.f32 %v2223_v13, %v1419_v6  ;;  %v1435_v27 = vadd.f32 %v3756_v42, %v3734_v29 }
 0x18b   : > { %v1849_v54 = vadd.f32 %v2782_v8, %v1542_v24  ;;  %v2785_v57 = vadd.f32 %v2784_v20, %v2783_v12  ;;  %v2292_v20 = vld [vmem:[%s1087_s30 + $0x10] sm:$0xff] }
 0x18c   : > { %v2894_v50 = vpop.f32.mrb[20].mxu0  ;;  %v2915_v59 = vadd.f32 %v2226_v28, %v1422_v16  ;;  %v2284_v28 = vld [vmem:[%s1080_s16 + $0x10] sm:$0xff] }
 0x18d   : > { %v2897_v61 = vadd.f32 %v1849_v54, %v1403_v15  ;;  %v1852_v33 = vadd.f32 %v2785_v57, %v1547_v30  ;;  %v3799_v53 = vadd.f32 %v2909_v49, %v2894_v50  ;;  %v2263_v63 = vpop.f32.mrb[21].mxu0  ;;  %v2293_v54 = vld [vmem:[%s1087_s30 + $0x18] sm:$0xff]  ;;  %v1438_v57 = vadd.f32 %v3760_v44, %v3738_v31  ;;  %v2334_v31 = vld [vmem:[%s3832_s21] sm:$0xff] }
 0x18e   : > { %v3801_v1 = vadd.f32 %v2912_v52, %v2263_v63  ;;  %v2895_v7 = vpop.f32.mrb[22].mxu0  ;;  %v2282_v52 = vld [vmem:[%s1080_s16] sm:$0xff] }
 0x18f   : > { %v3804_v22 = vadd.f32 %v2897_v61, %v3718_v19  ;;  %v2903_v2 = vadd.f32 %v1852_v33, %v1406_v25  ;;  %v3806_v3 = vadd.f32 %v2915_v59, %v2895_v7  ;;  %v2266_v4 = vpop.f32.mrb[23].mxu0  ;;  %v2786_v5 = vpop.f32.mrb[24].mxu1  ;;  %v1427_v19 = vadd.f32 %v3758_v43, %v3722_v21 }
 0x190   : > { %v3808_v60 = vadd.f32 %v2918_v62, %v2266_v4  ;;  %v2787_v9 = vpop.f32.mrb[25].mxu1  ;;  %v2291_v62 = vld [vmem:[%s1087_s30 + $0x8] sm:$0xff]  ;;  %v2294_v6 = vmul.f32 %v2290_v55, %v2282_v52 }
 0x191   : > { %v3811_v26 = vadd.f32 %v2903_v2, %v3726_v23  ;;  %v2788_v10 = vadd.f32 %v2787_v9, %v2786_v5  ;;  %v2789_v32 = vpop.f32.mrb[26].mxu1  ;;  %v2295_v8 = vmul.f32 %v2291_v62, %v2283_v51  ;;  %v2335_v9 = vld [vmem:[%s3832_s21 + $0x8] sm:$0xff]  ;;  %v3921_v62 = vld [vmem:[#allocation18_spill] sm:$0xff] }
 0x192   : > { %v2790_v0 = vpop.f32.mrb[27].mxu1 }
 0x193   : > { %v1857_v48 = vadd.f32 %v2788_v10, %v3742_v34  ;;  %v2791_v47 = vadd.f32 %v2790_v0, %v2789_v32  ;;  %v3918_v10 = vld [vmem:[#allocation10_spill] sm:$0xff]  ;;  %v3919_v32 = vld [vmem:[#allocation23_spill] sm:$0xff]  ;;  %v2338_v0 = vmul.f32 %v2334_v31, %v2282_v52 }
 0x195   : > { %v2924_v23 = vadd.f32 %v1857_v48, %v1427_v19  ;;  %v1860_v13 = vadd.f32 %v2791_v47, %v3748_v38  ;;  %v3920_v19 = vld [vmem:[#allocation14_spill] sm:$0xff] }
 0x197   : > { %v2925_v14 = vadd.f32 %v2924_v23, %v3746_v37  ;;  %v2930_v18 = vadd.f32 %v1860_v13, %v1430_v58  ;;  %v2792_v12 = vpop.f32.mrb[28].mxu1  ;;  %v2285_v37 = vld [vmem:[%s1080_s16 + $0x18] sm:$0xff] }
 0x198   : > { %v2793_v16 = vpop.f32.mrb[29].mxu1  ;;  %v2297_v61 = vmul.f32 %v2293_v54, %v2285_v37 }
 0x199   : > { %v2298_v24 = vadd.f32 %v2925_v14, %v2294_v6  ;;  %v2931_v21 = vadd.f32 %v2930_v18, %v3752_v40  ;;  %v2794_v34 = vadd.f32 %v2793_v16, %v2792_v12  ;;  %v2795_v43 = vpop.f32.mrb[30].mxu1  ;;  %v2296_v40 = vmul.f32 %v2292_v20, %v2284_v28  ;;  %v3922_v18 = vld [vmem:[#allocation20_spill] sm:$0xff] }
 0x19a   : > { %v2796_v49 = vpop.f32.mrb[31].mxu1  ;;  %v2339_v6 = vmul.f32 %v2335_v9, %v2283_v51  ;;  %v2336_v16 = vld [vmem:[%s3832_s21 + $0x10] sm:$0xff] }
 0x19b   : > { %v2299_v46 = vadd.f32 %v2931_v21, %v2295_v8  ;;  %v1865_v38 = vadd.f32 %v2794_v34, %v3754_v41  ;;  %v2797_v15 = vadd.f32 %v2796_v49, %v2795_v43  ;;  %v2735_v47 = vmul.f32 -1.442695, %v2298_v24  ;;  %v3923_v34 = vld [vmem:[#allocation11_spill] sm:$0xff]  ;;  %v3924_v43 = vld [vmem:[#allocation21_spill] sm:$0xff] }
 0x19c   : > { %v1451_v52 = vadd.f32 %v3924_v43, %v3923_v34 }
 0x19d   : > { %v2921_v30 = vadd.f32 %v1865_v38, %v1435_v27  ;;  %v1868_v50 = vadd.f32 %v2797_v15, %v3762_v45  ;;  %v1443_v45 = vadd.f32 %v3776_v56, %v3702_v11  ;;  %v2736_v11 = vmul.f32 -1.442695, %v2299_v46  ;;  %v3925_v27 = vld [vmem:[#allocation15_spill] sm:$0xff]  ;;  %v3926_v15 = vld [vmem:[#allocation12_spill] sm:$0xff]  ;;  %v3927_v46 = vld [vmem:[#allocation22_spill] sm:$0xff] }
 0x19e   : > { %3056 = vpow2.f32 %v2735_v47  ;;  %v1454_v54 = vadd.f32 %v3927_v46, %v3926_v15  ;;  %v2280_v46 = vld [vmem:[%s3863_s23 + $0x10] sm:$0xff] }
 0x19f   : > { %v2922_v59 = vadd.f32 %v2921_v30, %v3744_v36  ;;  %v2927_v25 = vadd.f32 %v1868_v50, %v1438_v57  ;;  %v2798_v33 = vpop.f32.mrb[32].mxu1  ;;  %v3917_v36 = vld [vmem:[#allocation13_spill] sm:$0xff]  ;;  %3058 = vpow2.f32 %v2736_v11  ;;  %v2340_v57 = vmul.f32 %v2336_v16, %v2284_v28 }
 0x1a0   : > { %v2799_v29 = vpop.f32.mrb[33].mxu1  ;;  %v2337_v30 = vld [vmem:[%s3832_s21 + $0x18] sm:$0xff] }
 0x1a1   : > { %v2300_v42 = vadd.f32 %v2922_v59, %v2296_v40  ;;  %v2928_v41 = vadd.f32 %v2927_v25, %v3750_v39  ;;  %v2800_v63 = vadd.f32 %v2799_v29, %v2798_v33  ;;  %v2801_v7 = vpop.f32.mrb[34].mxu1  ;;  %v1446_v39 = vadd.f32 %v3919_v32, %v3918_v10  ;;  %v3928_v59 = vld [vmem:[#allocation16_spill] sm:$0xff]  ;;  %v3929_v33 = vld [vmem:[#allocation17_spill] sm:$0xff] }
 0x1a2   : > { %v2802_v44 = vpop.f32.mrb[35].mxu1 }
 0x1a3   : > { %v2301_v2 = vadd.f32 %v2928_v41, %v2297_v61  ;;  %v1873_v4 = vadd.f32 %v2800_v63, %v3917_v36  ;;  %v2803_v5 = vadd.f32 %v2802_v44, %v2801_v7  ;;  %v2737_v61 = vmul.f32 -1.442695, %v2300_v42  ;;  %v3930_v44 = vld [vmem:[#allocation19_spill] sm:$0xff] }
 0x1a4   : > { %v2341_v63 = vmul.f32 %v2337_v30, %v2285_v37 }
 0x1a5   : > { %v2936_v55 = vadd.f32 %v1873_v4, %v1443_v45  ;;  %v1876_v48 = vadd.f32 %v2803_v5, %v3920_v19  ;;  %v2738_v7 = vmul.f32 -1.442695, %v2301_v2 }
 0x1a7   : > { %v2937_v58 = vadd.f32 %v2936_v55, %v3921_v62  ;;  %v2942_v23 = vadd.f32 %v1876_v48, %v1446_v39  ;;  %v2804_v13 = vpop.f32.mrb[36].mxu1 }
 0x1a8   : > { %v2805_v56 = vpop.f32.mrb[37].mxu1  ;;  %v3057_v28 = vpop.eup %3056 }
 0x1a9   : > { %v2342_v14 = vadd.f32 %v2937_v58, %v2338_v0  ;;  %v2943_v8 = vadd.f32 %v2942_v23, %v3922_v18  ;;  %v2806_v12 = vadd.f32 %v2805_v56, %v2804_v13  ;;  %v2807_v21 = vpop.f32.mrb[38].mxu1  ;;  %v3059_v9 = vpop.eup %3058  ;;  %v2314_v10 = vadd.f32 1.0, %v3057_v28  ;;  %v2279_v18 = vld [vmem:[%s3863_s23 + $0x8] sm:$0xff] }
 0x1aa   : > { %v2808_v20 = vpop.f32.mrb[39].mxu1  ;;  %v2315_v32 = vadd.f32 1.0, %v3059_v9 }
 0x1ab   : > { %v2739_v24 = vmul.f32 -1.442695, %v2342_v14  ;;  %v2343_v49 = vadd.f32 %v2943_v8, %v2339_v6  ;;  %v1881_v38 = vadd.f32 %v2806_v12, %v3925_v27  ;;  %v2809_v51 = vadd.f32 %v2808_v20, %v2807_v21 }
 0x1ad   : > { %3060 = vpow2.f32 %v2739_v24  ;;  %v2740_v40 = vmul.f32 -1.442695, %v2343_v49  ;;  %v2933_v50 = vadd.f32 %v1881_v38, %v1451_v52  ;;  %v1884_v25 = vadd.f32 %v2809_v51, %v3928_v59  ;;  %v2281_v59 = vld [vmem:[%s3863_s23 + $0x18] sm:$0xff] }
 0x1af   : > { %3062 = vpow2.f32 %v2740_v40  ;;  %v2934_v29 = vadd.f32 %v2933_v50, %v3929_v33  ;;  %v2939_v41 = vadd.f32 %v1884_v25, %v1454_v54 }
 0x1b0   : > { %3064 = vpow2.f32 %v2737_v61 }
 0x1b1   : > { %v2344_v31 = vadd.f32 %v2934_v29, %v2340_v57  ;;  %v2940_v45 = vadd.f32 %v2939_v41, %v3930_v44  ;;  %3066 = vpow2.f32 %v2738_v7 }
 0x1b3   : > { %v2741_v36 = vmul.f32 -1.442695, %v2344_v31  ;;  %v2345_v4 = vadd.f32 %v2940_v45, %v2341_v63 }
 0x1b5   : > { %3068 = vpow2.f32 %v2741_v36  ;;  %v2742_v5 = vmul.f32 -1.442695, %v2345_v4 }
 0x1b6   : > { %3070 = vtanh.f32 %v3785_v35 }
 0x1b7   : > { %v3061_v42 = vpop.eup %3060  ;;  %3072 = vpow2.f32 %v2742_v5 }
 0x1b8   : > { %3074 = vtanh.f32 %v3801_v1  ;;  %v2358_v37 = vadd.f32 1.0, %v3061_v42 }
 0x1b9   : > { %v3063_v2 = vpop.eup %3062  ;;  %3076 = vtanh.f32 %v3808_v60 }
 0x1ba   : > { %3078 = vrcp.f32 %v2358_v37  ;;  %v2359_v39 = vadd.f32 1.0, %v3063_v2  ;;  %v3065_v55 = vpop.eup %3064 }
 0x1bb   : > { %3080 = vrcp.f32 %v2314_v10  ;;  %v3067_v0 = vpop.eup %3066  ;;  %v2316_v19 = vadd.f32 1.0, %v3065_v55 }
 0x1bc   : > { %3082 = vrcp.f32 %v2359_v39  ;;  %v2317_v62 = vadd.f32 1.0, %v3067_v0 }
 0x1bd   : > { %3084 = vtanh.f32 %v3789_v17 }
 0x1be   : > { %3086 = vrcp.f32 %v2315_v32 }
 0x1bf   : > { %v3069_v35 = vpop.eup %3068  ;;  %3088 = vtanh.f32 %v3799_v53 }
 0x1c0   : > { %v3071_v48 = vpop.eup %3070  ;;  %3090 = vtanh.f32 %v3804_v22  ;;  %v2360_v1 = vadd.f32 1.0, %v3069_v35  ;;  %v2278_v22 = vld [vmem:[%s3863_s23] sm:$0xff] }
 0x1c1   : > { %v3073_v60 = vpop.eup %3072  ;;  %3092 = vtanh.f32 %v3806_v3 }
 0x1c2   : > { %v3075_v47 = vpop.eup %3074  ;;  %3094 = vrcp.f32 %v2360_v1  ;;  %v2361_v58 = vadd.f32 1.0, %v3073_v60 }
 0x1c3   : > { %v3077_v23 = vpop.eup %3076  ;;  %3096 = vrcp.f32 %v2316_v19 }
 0x1c4   : > { %v3079_v17 = vpop.eup %3078  ;;  %3098 = vrcp.f32 %v2361_v58 }
 0x1c5   : > { %v3081_v6 = vpop.eup %3080  ;;  %3100 = vtanh.f32 %v3811_v26  ;;  %v2386_v53 = vmul.f32 %v3079_v17, %v3075_v47 }
 0x1c6   : > { %v3083_v13 = vpop.eup %3082  ;;  %3102 = vrcp.f32 %v2317_v62  ;;  %v2326_v12 = vmul.f32 0.1, %v3081_v6 }
 0x1c7   : > { %v3085_v3 = vpop.eup %3084  ;;  %v2390_v11 = vadd.f32 %v3071_v48, %v2386_v53  ;;  %v2387_v56 = vmul.f32 %v3083_v13, %v3077_v23 }
 0x1c8   : > { %v3087_v14 = vpop.eup %3086 }
 0x1c9   : > { %v3089_v8 = vpop.eup %3088  ;;  %v2394_v16 = vsub.f32 %v2390_v11, %v2278_v22  ;;  %v2391_v21 = vadd.f32 %v3085_v3, %v2387_v56  ;;  %v2327_v43 = vmul.f32 0.1, %v3087_v14 }
 0x1ca   : > { %v3091_v26 = vpop.eup %3090 }
 0x1cb   : > { %v3093_v34 = vpop.eup %3092  ;;  %v2398_v52 = vmul.f32 %v2394_v16, %v2326_v12  ;;  %v2395_v20 = vsub.f32 %v2391_v21, %v2279_v18 }
 0x1cc   : > { %v3095_v24 = vpop.eup %3094 }
 0x1cd   : > { %v3097_v49 = vpop.eup %3096  ;;  %v2402_v27 = vadd.f32 %v2398_v52, %v2278_v22  ;;  %v2399_v38 = vmul.f32 %v2395_v20, %v2327_v43  ;;  %v2388_v51 = vmul.f32 %v3095_v24, %v3089_v8 }
 0x1ce   : > { %v3099_v15 = vpop.eup %3098  ;;  %v2328_v25 = vmul.f32 0.1, %v3097_v49 }
 0x1cf   : > { %v3101_v54 = vpop.eup %3100  ;;  %2406 = vst [vmem:[%s1157_s14] sm:$0xff] %v2402_v27  ;;  %v2403_v57 = vadd.f32 %v2399_v38, %v2279_v18  ;;  %v2392_v30 = vadd.f32 %v3091_v26, %v2388_v51  ;;  %v2389_v40 = vmul.f32 %v3099_v15, %v3093_v34 }
 0x1d0   : > { %v3103_v50 = vpop.eup %3102 }
 0x1d1   : > { %2407 = vst [vmem:[%s1157_s14 + $0x8] sm:$0xff] %v2403_v57  ;;  %v2396_v61 = vsub.f32 %v2392_v30, %v2280_v46  ;;  %v2393_v33 = vadd.f32 %v3101_v54, %v2389_v40  ;;  %v2329_v29 = vmul.f32 0.1, %v3103_v50 }
 0x1d3   : > { %v2400_v41 = vmul.f32 %v2396_v61, %v2328_v25  ;;  %v2397_v63 = vsub.f32 %v2393_v33, %v2281_v59  ;;  %2416 = sbr.rel (!%p3233_p5) target bundleno = 482 (0x1e2), region = 351 }
 0x1d5   : > { %v2404_v7 = vadd.f32 %v2400_v41, %v2280_v46  ;;  %v2401_v31 = vmul.f32 %v2397_v63, %v2329_v29 }
 0x1d6   : > { %v2452_v45 = vld [vmem:[%s1157_s14] sm:$0xff] (%p3233_p5) }
 0x1d7   : > { %2408 = vst [vmem:[%s1157_s14 + $0x10] sm:$0xff] %v2404_v7  ;;  %v2405_v44 = vadd.f32 %v2401_v31, %v2281_v59  ;;  %2453 = vst [vmem:[%s2418_s20] sm:$0xff] (%p3233_p5), %v2452_v45 }
 0x1d8   : > { %v2454_v36 = vld [vmem:[%s1157_s14 + $0x8] sm:$0xff] (%p3233_p5) }
 0x1d9   : > { %2409 = vst [vmem:[%s1157_s14 + $0x18] sm:$0xff] %v2405_v44  ;;  %2455 = vst [vmem:[%s2418_s20 + $0x20] sm:$0xff] (%p3233_p5), %v2454_v36 }
 0x1de   : > { %v2456_v4 = vld [vmem:[%s1157_s14 + $0x10] sm:$0xff] }
 0x1df   : > { %2457 = vst [vmem:[%s2418_s20 + $0x40] sm:$0xff] %v2456_v4 }
 0x1e0   : > { %v2458_v28 = vld [vmem:[%s1157_s14 + $0x18] sm:$0xff] }
 0x1e1   : > { %2459 = vst [vmem:[%s2418_s20 + $0x60] sm:$0xff] %v2458_v28 }
 0x1e2 PF: > { %p20_p10 = scmp.ge.s32.totalorder %s3216_s29, 6   ;;  %s3931_s25 = smov %s3122_s26 }
 0x1e3   : > { %s3932_s26 = smov %s3227_s15  ;;  %s3933_s27 = smov %s3216_s29 }
 0x1e4   :  { %22 = sbr.rel (!%p20_p10) target bundleno = 2 (0x2), region = 468 }

</bundles_post_ra>
